<compile_context>
chip_gen: v7x
topology: tpu7x:2x2x1
jax: 0.10.0
libtpu: 0.0.40
codegen_flags: <defaults>
</compile_context>

<pallas_src>
import math

import jax
import jax.numpy as jnp
from jax.experimental import pallas as pl
from jax.experimental.pallas import tpu as pltpu


def edgegnn_kernel(x_ref, a_in_ref, a_out_ref,
                   w11a_ref, b11a_ref, w11b_ref, b11b_ref,
                   w21a_ref, w21b_ref, b21_ref,
                   w22_ref, b22_ref,
                   we11a_ref, we11b_ref, be11_ref,
                   we12_ref, be12_ref,
                   z_ref,
                   t_s, ha_s, hb_s):
    f32 = jnp.float32
    it = pl.program_id(0)   # message-passing iteration (outer, sequential)
    eb = pl.program_id(1)   # edge block (inner, reduction into ha_s/hb_s)

    # ---- node-side update: once per iteration, at the first edge block ----
    @pl.when(eb == 0)
    def _node_update():
        @pl.when(it == 0)
        def _init_from_inputs():
            # x = relu(fc_node_1_1(inputs)), kept as two (N, nhid) halves.
            x = x_ref[...]
            ha_s[...] = jnp.maximum(
                jnp.dot(x, w11a_ref[...], preferred_element_type=f32)
                + b11a_ref[...], 0.0)
            hb_s[...] = jnp.maximum(
                jnp.dot(x, w11b_ref[...], preferred_element_type=f32)
                + b11b_ref[...], 0.0)

        # x = relu(fc_node_2_1(cat(ha, hb))); dropout(id); x = relu(fc_node_2_2(x))
        t = jnp.maximum(
            jnp.dot(ha_s[...], w21a_ref[...], preferred_element_type=f32)
            + jnp.dot(hb_s[...], w21b_ref[...], preferred_element_type=f32)
            + b21_ref[...], 0.0)
        t = jnp.maximum(
            jnp.dot(t, w22_ref[...], preferred_element_type=f32)
            + b22_ref[...], 0.0)
        t_s[...] = t
        # Reset accumulators for this iteration's edge->node scatter.
        ha_s[...] = jnp.zeros_like(ha_s)
        hb_s[...] = jnp.zeros_like(hb_s)

    # ---- edge-side update for this block of edges --------------------------
    a_in = a_in_ref[...]                        # (TE, N) bf16, one-hot rows
    a_out = a_out_ref[...]
    t_b = t_s[...].astype(a_in.dtype)           # bf16 operands, f32 accumulate

    x_in = jnp.dot(a_in, t_b, preferred_element_type=f32)    # (TE, H)
    x_out = jnp.dot(a_out, t_b, preferred_element_type=f32)

    # x = relu(fc_edge_1_1(cat)); dropout(id); x = relu(fc_edge_1_2(x))
    e = jnp.maximum(
        jnp.dot(x_in, we11a_ref[...], preferred_element_type=f32)
        + jnp.dot(x_out, we11b_ref[...], preferred_element_type=f32)
        + be11_ref[...], 0.0)
    e = jnp.maximum(
        jnp.dot(e, we12_ref[...], preferred_element_type=f32)
        + be12_ref[...], 0.0)
    z_ref[...] = e

    # ---- edge -> node scatter: n2e.T @ e without an explicit transpose -----
    e_b = e.astype(a_in.dtype)
    contract_e = (((0,), (0,)), ((), ()))       # contract over the edge axis
    ha_s[...] += jax.lax.dot_general(a_in, e_b, contract_e,
                                     preferred_element_type=f32)
    hb_s[...] += jax.lax.dot_general(a_out, e_b, contract_e,
                                     preferred_element_type=f32)


def _round_up(n, m):
    return -(-n // m) * m


def _pad2(a, rows, cols, dtype=jnp.float32):
    a = a.astype(dtype)
    return jnp.pad(a, ((0, rows - a.shape[0]), (0, cols - a.shape[1])))


def edgegnn_forward(params, inputs, n2e_in, n2e_out, niter, *, block_e=None):
    if niter < 1:
        raise ValueError("EdgeGNN.forward requires niter >= 1 "
                         "(the edge embedding is undefined otherwise).")

    N, nfeat = inputs.shape
    E = n2e_in.shape[0]
    nhid = params["w22"].shape[0]

    # Hardware-friendly padded sizes (padding is zero-filled and exact).
    N_p = _round_up(N, 8)
    F_p = _round_up(nfeat, 128)
    H_p = _round_up(nhid, 128)
    if block_e is None:
        block_e = min(512, _round_up(E, 8))
    block_e = _round_up(block_e, 8)
    E_p = _round_up(E, block_e)
    n_eblk = E_p // block_e

    # Data: incidence in bf16 (0/1 exact), node features in f32.
    x_p = _pad2(inputs, N_p, F_p)
    a_in_p = _pad2(n2e_in, E_p, N_p, jnp.bfloat16)
    a_out_p = _pad2(n2e_out, E_p, N_p, jnp.bfloat16)

    # Host-side split of the "cat" linears + zero padding to lane-aligned H_p.
    H = nhid
    w11, b11 = params["w11"], params["b11"]
    w21, b21 = params["w21"], params["b21"]
    we11, be11 = params["we11"], params["be11"]
    weights = (
        _pad2(w11[:, :H], F_p, H_p), _pad2(b11[:, :H], 1, H_p),   # fc_node_1_1 (a|b)
        _pad2(w11[:, H:], F_p, H_p), _pad2(b11[:, H:], 1, H_p),
        _pad2(w21[:H, :], H_p, H_p), _pad2(w21[H:, :], H_p, H_p), # fc_node_2_1 (a|b)
        _pad2(b21, 1, H_p),
        _pad2(params["w22"], H_p, H_p), _pad2(params["b22"], 1, H_p),   # fc_node_2_2
        _pad2(we11[:H, :], H_p, H_p), _pad2(we11[H:, :], H_p, H_p),     # fc_edge_1_1
        _pad2(be11, 1, H_p),
        _pad2(params["we12"], H_p, H_p), _pad2(params["be12"], 1, H_p), # fc_edge_1_2
    )
    args = (x_p, a_in_p, a_out_p) + weights

    const = lambda i, j: (0, 0)
    eblk = lambda i, j: (j, 0)
    in_specs = ([pl.BlockSpec((N_p, F_p), const),
                 pl.BlockSpec((block_e, N_p), eblk),
                 pl.BlockSpec((block_e, N_p), eblk)]
                + [pl.BlockSpec(w.shape, const) for w in weights])
    out_specs = pl.BlockSpec((block_e, H_p), eblk)

    # Scoped-VMEM budget: double-buffered streamed blocks + resident weights +
    # scratch, with 2x headroom (kept well below physical VMEM on all gens).
    est = (2 * x_p.size * 4
           + 2 * 2 * block_e * N_p * 2          # a_in/a_out blocks (bf16, 2x buf)
           + 2 * sum(w.size * 4 for w in weights)
           + 2 * block_e * H_p * 4              # z block (2x buf)
           + 3 * N_p * H_p * 4)                 # scratch t/ha/hb
    vmem_limit = int(min(96 * 2 ** 20, max(4 * 2 ** 20, 2 * est)))

    z_p = pl.pallas_call(
        edgegnn_kernel,
        out_shape=jax.ShapeDtypeStruct((E_p, H_p), jnp.float32),
        grid_spec=pltpu.PrefetchScalarGridSpec(
            num_scalar_prefetch=0,
            grid=(niter, n_eblk),
            in_specs=in_specs,
            out_specs=out_specs,
            scratch_shapes=[pltpu.VMEM((N_p, H_p), jnp.float32),   # t
                            pltpu.VMEM((N_p, H_p), jnp.float32),   # ha acc
                            pltpu.VMEM((N_p, H_p), jnp.float32)]), # hb acc
        compiler_params=pltpu.CompilerParams(
            dimension_semantics=("arbitrary", "arbitrary"),
            vmem_limit_bytes=vmem_limit),
    )(*args)

    z = z_p[:E, :nhid]
    # dec + sigmoid outside the kernel (lane-dense kernel output, tiny GEMV
    # handled by XLA for free).
    preds = jax.nn.sigmoid(z @ params["wdec"] + params["bdec"])
    return preds.reshape(-1), z


def torch_linear_init(key, fan_in, fan_out):
    """PyTorch nn.Linear default init: U(-1/sqrt(fan_in), 1/sqrt(fan_in))."""
    kw, kb = jax.random.split(key)
    bound = 1.0 / math.sqrt(fan_in)
    # stored transposed: (in, out), so y = x @ W + b
    w = jax.random.uniform(kw, (fan_in, fan_out), jnp.float32, -bound, bound)
    b = jax.random.uniform(kb, (1, fan_out), jnp.float32, -bound, bound)
    return w, b


def make_params(key, nfeat, nhid):
    ks = jax.random.split(key, 6)
    p = {}
    p["w11"], p["b11"] = torch_linear_init(ks[0], nfeat, 2 * nhid)      # fc_node_1_1
    p["w21"], p["b21"] = torch_linear_init(ks[1], 2 * nhid, nhid)       # fc_node_2_1
    p["w22"], p["b22"] = torch_linear_init(ks[2], nhid, nhid)           # fc_node_2_2
    p["we11"], p["be11"] = torch_linear_init(ks[3], 2 * nhid, nhid)     # fc_edge_1_1
    p["we12"], p["be12"] = torch_linear_init(ks[4], nhid, nhid)         # fc_edge_1_2
    p["wdec"], p["bdec"] = torch_linear_init(ks[5], nhid, 1)            # dec
    return p


def reference_forward(params, inputs, n2e_in, n2e_out, niter):
    """Pure-JAX f32 reference matching the PyTorch forward (eval mode)."""
    relu = jax.nn.relu
    x = relu(inputs @ params["w11"] + params["b11"])
    e = None
    for _ in range(niter):
        x = relu(x @ params["w21"] + params["b21"])
        x = relu(x @ params["w22"] + params["b22"])
        x_in = n2e_in @ x
        x_out = n2e_out @ x
        x = jnp.concatenate([x_in, x_out], axis=1)
        x = relu(x @ params["we11"] + params["be11"])
        x = relu(x @ params["we12"] + params["be12"])
        e = x
        x_in = n2e_in.T @ x
        x_out = n2e_out.T @ x
        x = jnp.concatenate([x_in, x_out], axis=1)
    preds = jax.nn.sigmoid(e @ params["wdec"] + params["bdec"])
    return preds.reshape(-1), e


if __name__ == "__main__":
    # Small synthetic graph: N nodes, E directed edges.
    N, E, nfeat, nhid, niter = 16, 24, 8, 32, 2

    key = jax.random.PRNGKey(0)
    k_x, k_src, k_dst, k_params = jax.random.split(key, 4)

    inputs = jax.random.normal(k_x, (N, nfeat), jnp.float32)

    src = jax.random.randint(k_src, (E,), 0, N)
    dst = jax.random.randint(k_dst, (E,), 0, N)
    n2e_in = jnp.zeros((E, N), jnp.float32).at[jnp.arange(E), src].set(1.0)
    n2e_out = jnp.zeros((E, N), jnp.float32).at[jnp.arange(E), dst].set(1.0)

    params = make_params(k_params, nfeat, nhid)

    # block_e=8 -> 3 edge blocks, exercises the (niter, edge-block) grid.
    preds, z = edgegnn_forward(params, inputs, n2e_in, n2e_out, niter,
                               block_e=8)
    jax.block_until_ready((preds, z))

    preds_ref, z_ref = reference_forward(params, inputs, n2e_in, n2e_out, niter)
    assert preds.shape == (E,) and z.shape == (E, nhid)
    # bf16 operands in the incidence matmuls add ~1e-3 relative error vs the
    # pure-f32 reference; 2e-2 tolerance is ample.
    assert jnp.allclose(preds, preds_ref, atol=2e-2, rtol=2e-2)
    assert jnp.allclose(z, z_ref, atol=2e-2, rtol=2e-2)

    print("KERNEL_OK")
</pallas_src>

<mosaic_0001>
module attributes {stable_mosaic.version = 11 : i64} {
  func.func @edgegnn_kernel(%arg0: i32, %arg1: i32, %arg2: memref<16x128xf32, #tpu.memory_space<vmem>>, %arg3: memref<8x16xbf16, #tpu.memory_space<vmem>>, %arg4: memref<8x16xbf16, #tpu.memory_space<vmem>>, %arg5: memref<128x128xf32, #tpu.memory_space<vmem>>, %arg6: memref<1x128xf32, #tpu.memory_space<vmem>>, %arg7: memref<128x128xf32, #tpu.memory_space<vmem>>, %arg8: memref<1x128xf32, #tpu.memory_space<vmem>>, %arg9: memref<128x128xf32, #tpu.memory_space<vmem>>, %arg10: memref<128x128xf32, #tpu.memory_space<vmem>>, %arg11: memref<1x128xf32, #tpu.memory_space<vmem>>, %arg12: memref<128x128xf32, #tpu.memory_space<vmem>>, %arg13: memref<1x128xf32, #tpu.memory_space<vmem>>, %arg14: memref<128x128xf32, #tpu.memory_space<vmem>>, %arg15: memref<128x128xf32, #tpu.memory_space<vmem>>, %arg16: memref<1x128xf32, #tpu.memory_space<vmem>>, %arg17: memref<128x128xf32, #tpu.memory_space<vmem>>, %arg18: memref<1x128xf32, #tpu.memory_space<vmem>>, %arg19: memref<8x128xf32, #tpu.memory_space<vmem>>, %arg20: memref<16x128xf32, #tpu.memory_space<vmem>>, %arg21: memref<16x128xf32, #tpu.memory_space<vmem>>, %arg22: memref<16x128xf32, #tpu.memory_space<vmem>>) attributes {dimension_semantics = [#tpu.dimension_semantics<arbitrary>, #tpu.dimension_semantics<arbitrary>], iteration_bounds = array<i64: 2, 3>, scalar_prefetch = 0 : i64, scratch_operands = 3 : i64, tpu.core_type = #tpu.core_type<tc>, window_params = [{pipeline_mode = #tpu.pipeline_mode<synchronous>, transform_indices = @transform_0, window_bounds = array<i64: 16, 128>}, {transform_indices = @transform_1, window_bounds = array<i64: 8, 16>}, {transform_indices = @transform_2, window_bounds = array<i64: 8, 16>}, {pipeline_mode = #tpu.pipeline_mode<synchronous>, transform_indices = @transform_3, window_bounds = array<i64: 128, 128>}, {pipeline_mode = #tpu.pipeline_mode<synchronous>, transform_indices = @transform_4, window_bounds = array<i64: 1, 128>}, {pipeline_mode = #tpu.pipeline_mode<synchronous>, transform_indices = @transform_5, window_bounds = array<i64: 128, 128>}, {pipeline_mode = #tpu.pipeline_mode<synchronous>, transform_indices = @transform_6, window_bounds = array<i64: 1, 128>}, {pipeline_mode = #tpu.pipeline_mode<synchronous>, transform_indices = @transform_7, window_bounds = array<i64: 128, 128>}, {pipeline_mode = #tpu.pipeline_mode<synchronous>, transform_indices = @transform_8, window_bounds = array<i64: 128, 128>}, {pipeline_mode = #tpu.pipeline_mode<synchronous>, transform_indices = @transform_9, window_bounds = array<i64: 1, 128>}, {pipeline_mode = #tpu.pipeline_mode<synchronous>, transform_indices = @transform_10, window_bounds = array<i64: 128, 128>}, {pipeline_mode = #tpu.pipeline_mode<synchronous>, transform_indices = @transform_11, window_bounds = array<i64: 1, 128>}, {pipeline_mode = #tpu.pipeline_mode<synchronous>, transform_indices = @transform_12, window_bounds = array<i64: 128, 128>}, {pipeline_mode = #tpu.pipeline_mode<synchronous>, transform_indices = @transform_13, window_bounds = array<i64: 128, 128>}, {pipeline_mode = #tpu.pipeline_mode<synchronous>, transform_indices = @transform_14, window_bounds = array<i64: 1, 128>}, {pipeline_mode = #tpu.pipeline_mode<synchronous>, transform_indices = @transform_15, window_bounds = array<i64: 128, 128>}, {pipeline_mode = #tpu.pipeline_mode<synchronous>, transform_indices = @transform_16, window_bounds = array<i64: 1, 128>}, {transform_indices = @transform_17, window_bounds = array<i64: 8, 128>}]} {
    %c0_i32 = arith.constant 0 : i32
    %0 = arith.cmpi eq, %arg1, %c0_i32 : i32
    %1 = arith.extui %0 : i1 to i32
    %c0_i32_0 = arith.constant 0 : i32
    %2 = arith.cmpi ne, %1, %c0_i32_0 : i32
    scf.if %2 {
      %c0_i32_34 = arith.constant 0 : i32
      %36 = arith.cmpi eq, %arg0, %c0_i32_34 : i32
      %37 = arith.extui %36 : i1 to i32
      %c0_i32_35 = arith.constant 0 : i32
      %38 = arith.cmpi ne, %37, %c0_i32_35 : i32
      scf.if %38 {
        %c0_63 = arith.constant 0 : index
        %c0_64 = arith.constant 0 : index
        %63 = vector.load %arg2[%c0_63, %c0_64] : memref<16x128xf32, #tpu.memory_space<vmem>>, vector<16x128xf32>
        %c0_65 = arith.constant 0 : index
        %c0_66 = arith.constant 0 : index
        %64 = vector.load %arg5[%c0_65, %c0_66] : memref<128x128xf32, #tpu.memory_space<vmem>>, vector<128x128xf32>
        %cst_67 = arith.constant dense<0.000000e+00> : vector<16x128xf32>
        %65 = tpu.matmul %63, %64, %cst_67 {dimension_numbers = #tpu.dot_dimension_numbers<[1], [0], [0], [1], [0, 0, 1, 1], [], []>} : vector<16x128xf32>, vector<128x128xf32>, vector<16x128xf32> -> vector<16x128xf32>
        %c0_68 = arith.constant 0 : index
        %c0_69 = arith.constant 0 : index
        %66 = vector.load %arg6[%c0_68, %c0_69] : memref<1x128xf32, #tpu.memory_space<vmem>>, vector<1x128xf32>
        %67 = vector.broadcast %66 : vector<1x128xf32> to vector<16x128xf32>
        %68 = arith.addf %65, %67 : vector<16x128xf32>
        %cst_70 = arith.constant 0.000000e+00 : f32
        %69 = vector.broadcast %cst_70 : f32 to vector<16x128xf32>
        %70 = arith.maximumf %68, %69 : vector<16x128xf32>
        %c0_71 = arith.constant 0 : index
        %c0_72 = arith.constant 0 : index
        %71 = vector.load %arg21[%c0_71, %c0_72] : memref<16x128xf32, #tpu.memory_space<vmem>>, vector<16x128xf32>
        tpu.vector_store %arg21[%c0_71, %c0_72], %70 {strides = array<i32>} : memref<16x128xf32, #tpu.memory_space<vmem>>, vector<16x128xf32>,
        %c0_73 = arith.constant 0 : index
        %c0_74 = arith.constant 0 : index
        %72 = vector.load %arg7[%c0_73, %c0_74] : memref<128x128xf32, #tpu.memory_space<vmem>>, vector<128x128xf32>
        %cst_75 = arith.constant dense<0.000000e+00> : vector<16x128xf32>
        %73 = tpu.matmul %63, %72, %cst_75 {dimension_numbers = #tpu.dot_dimension_numbers<[1], [0], [0], [1], [0, 0, 1, 1], [], []>} : vector<16x128xf32>, vector<128x128xf32>, vector<16x128xf32> -> vector<16x128xf32>
        %c0_76 = arith.constant 0 : index
        %c0_77 = arith.constant 0 : index
        %74 = vector.load %arg8[%c0_76, %c0_77] : memref<1x128xf32, #tpu.memory_space<vmem>>, vector<1x128xf32>
        %75 = vector.broadcast %74 : vector<1x128xf32> to vector<16x128xf32>
        %76 = arith.addf %73, %75 : vector<16x128xf32>
        %cst_78 = arith.constant 0.000000e+00 : f32
        %77 = vector.broadcast %cst_78 : f32 to vector<16x128xf32>
        %78 = arith.maximumf %76, %77 : vector<16x128xf32>
        %c0_79 = arith.constant 0 : index
        %c0_80 = arith.constant 0 : index
        %79 = vector.load %arg22[%c0_79, %c0_80] : memref<16x128xf32, #tpu.memory_space<vmem>>, vector<16x128xf32>
        tpu.vector_store %arg22[%c0_79, %c0_80], %78 {strides = array<i32>} : memref<16x128xf32, #tpu.memory_space<vmem>>, vector<16x128xf32>,
      } else {
      }
      %c0_36 = arith.constant 0 : index
      %c0_37 = arith.constant 0 : index
      %39 = vector.load %arg21[%c0_36, %c0_37] : memref<16x128xf32, #tpu.memory_space<vmem>>, vector<16x128xf32>
      %c0_38 = arith.constant 0 : index
      %c0_39 = arith.constant 0 : index
      %40 = vector.load %arg9[%c0_38, %c0_39] : memref<128x128xf32, #tpu.memory_space<vmem>>, vector<128x128xf32>
      %cst_40 = arith.constant dense<0.000000e+00> : vector<16x128xf32>
      %41 = tpu.matmul %39, %40, %cst_40 {dimension_numbers = #tpu.dot_dimension_numbers<[1], [0], [0], [1], [0, 0, 1, 1], [], []>} : vector<16x128xf32>, vector<128x128xf32>, vector<16x128xf32> -> vector<16x128xf32>
      %c0_41 = arith.constant 0 : index
      %c0_42 = arith.constant 0 : index
      %42 = vector.load %arg22[%c0_41, %c0_42] : memref<16x128xf32, #tpu.memory_space<vmem>>, vector<16x128xf32>
      %c0_43 = arith.constant 0 : index
      %c0_44 = arith.constant 0 : index
      %43 = vector.load %arg10[%c0_43, %c0_44] : memref<128x128xf32, #tpu.memory_space<vmem>>, vector<128x128xf32>
      %cst_45 = arith.constant dense<0.000000e+00> : vector<16x128xf32>
      %44 = tpu.matmul %42, %43, %cst_45 {dimension_numbers = #tpu.dot_dimension_numbers<[1], [0], [0], [1], [0, 0, 1, 1], [], []>} : vector<16x128xf32>, vector<128x128xf32>, vector<16x128xf32> -> vector<16x128xf32>
      %45 = arith.addf %41, %44 : vector<16x128xf32>
      %c0_46 = arith.constant 0 : index
      %c0_47 = arith.constant 0 : index
      %46 = vector.load %arg11[%c0_46, %c0_47] : memref<1x128xf32, #tpu.memory_space<vmem>>, vector<1x128xf32>
      %47 = vector.broadcast %46 : vector<1x128xf32> to vector<16x128xf32>
      %48 = arith.addf %45, %47 : vector<16x128xf32>
      %cst_48 = arith.constant 0.000000e+00 : f32
      %49 = vector.broadcast %cst_48 : f32 to vector<16x128xf32>
      %50 = arith.maximumf %48, %49 : vector<16x128xf32>
      %c0_49 = arith.constant 0 : index
      %c0_50 = arith.constant 0 : index
      %51 = vector.load %arg12[%c0_49, %c0_50] : memref<128x128xf32, #tpu.memory_space<vmem>>, vector<128x128xf32>
      %cst_51 = arith.constant dense<0.000000e+00> : vector<16x128xf32>
      %52 = tpu.matmul %50, %51, %cst_51 {dimension_numbers = #tpu.dot_dimension_numbers<[1], [0], [0], [1], [0, 0, 1, 1], [], []>} : vector<16x128xf32>, vector<128x128xf32>, vector<16x128xf32> -> vector<16x128xf32>
      %c0_52 = arith.constant 0 : index
      %c0_53 = arith.constant 0 : index
      %53 = vector.load %arg13[%c0_52, %c0_53] : memref<1x128xf32, #tpu.memory_space<vmem>>, vector<1x128xf32>
      %54 = vector.broadcast %53 : vector<1x128xf32> to vector<16x128xf32>
      %55 = arith.addf %52, %54 : vector<16x128xf32>
      %cst_54 = arith.constant 0.000000e+00 : f32
      %56 = vector.broadcast %cst_54 : f32 to vector<16x128xf32>
      %57 = arith.maximumf %55, %56 : vector<16x128xf32>
      %c0_55 = arith.constant 0 : index
      %c0_56 = arith.constant 0 : index
      %58 = vector.load %arg20[%c0_55, %c0_56] : memref<16x128xf32, #tpu.memory_space<vmem>>, vector<16x128xf32>
      tpu.vector_store %arg20[%c0_55, %c0_56], %57 {strides = array<i32>} : memref<16x128xf32, #tpu.memory_space<vmem>>, vector<16x128xf32>,
      %cst_57 = arith.constant 0.000000e+00 : f32
      %59 = vector.broadcast %cst_57 : f32 to vector<16x128xf32>
      %c0_58 = arith.constant 0 : index
      %c0_59 = arith.constant 0 : index
      %60 = vector.load %arg21[%c0_58, %c0_59] : memref<16x128xf32, #tpu.memory_space<vmem>>, vector<16x128xf32>
      tpu.vector_store %arg21[%c0_58, %c0_59], %59 {strides = array<i32>} : memref<16x128xf32, #tpu.memory_space<vmem>>, vector<16x128xf32>,
      %cst_60 = arith.constant 0.000000e+00 : f32
      %61 = vector.broadcast %cst_60 : f32 to vector<16x128xf32>
      %c0_61 = arith.constant 0 : index
      %c0_62 = arith.constant 0 : index
      %62 = vector.load %arg22[%c0_61, %c0_62] : memref<16x128xf32, #tpu.memory_space<vmem>>, vector<16x128xf32>
      tpu.vector_store %arg22[%c0_61, %c0_62], %61 {strides = array<i32>} : memref<16x128xf32, #tpu.memory_space<vmem>>, vector<16x128xf32>,
    } else {
    }
    %c0 = arith.constant 0 : index
    %c0_1 = arith.constant 0 : index
    %3 = vector.load %arg3[%c0, %c0_1] : memref<8x16xbf16, #tpu.memory_space<vmem>>, vector<8x16xbf16>
    %c0_2 = arith.constant 0 : index
    %c0_3 = arith.constant 0 : index
    %4 = vector.load %arg4[%c0_2, %c0_3] : memref<8x16xbf16, #tpu.memory_space<vmem>>, vector<8x16xbf16>
    %c0_4 = arith.constant 0 : index
    %c0_5 = arith.constant 0 : index
    %5 = vector.load %arg20[%c0_4, %c0_5] : memref<16x128xf32, #tpu.memory_space<vmem>>, vector<16x128xf32>
    %6 = arith.truncf %5 : vector<16x128xf32> to vector<16x128xbf16>
    %cst = arith.constant dense<0.000000e+00> : vector<8x128xf32>
    %7 = tpu.matmul %3, %6, %cst {dimension_numbers = #tpu.dot_dimension_numbers<[1], [0], [0], [1], [0, 0, 1, 1], [], []>} : vector<8x16xbf16>, vector<16x128xbf16>, vector<8x128xf32> -> vector<8x128xf32>
    %cst_6 = arith.constant dense<0.000000e+00> : vector<8x128xf32>
    %8 = tpu.matmul %4, %6, %cst_6 {dimension_numbers = #tpu.dot_dimension_numbers<[1], [0], [0], [1], [0, 0, 1, 1], [], []>} : vector<8x16xbf16>, vector<16x128xbf16>, vector<8x128xf32> -> vector<8x128xf32>
    %c0_7 = arith.constant 0 : index
    %c0_8 = arith.constant 0 : index
    %9 = vector.load %arg14[%c0_7, %c0_8] : memref<128x128xf32, #tpu.memory_space<vmem>>, vector<128x128xf32>
    %cst_9 = arith.constant dense<0.000000e+00> : vector<8x128xf32>
    %10 = tpu.matmul %7, %9, %cst_9 {dimension_numbers = #tpu.dot_dimension_numbers<[1], [0], [0], [1], [0, 0, 1, 1], [], []>} : vector<8x128xf32>, vector<128x128xf32>, vector<8x128xf32> -> vector<8x128xf32>
    %c0_10 = arith.constant 0 : index
    %c0_11 = arith.constant 0 : index
    %11 = vector.load %arg15[%c0_10, %c0_11] : memref<128x128xf32, #tpu.memory_space<vmem>>, vector<128x128xf32>
    %cst_12 = arith.constant dense<0.000000e+00> : vector<8x128xf32>
    %12 = tpu.matmul %8, %11, %cst_12 {dimension_numbers = #tpu.dot_dimension_numbers<[1], [0], [0], [1], [0, 0, 1, 1], [], []>} : vector<8x128xf32>, vector<128x128xf32>, vector<8x128xf32> -> vector<8x128xf32>
    %13 = arith.addf %10, %12 : vector<8x128xf32>
    %c0_13 = arith.constant 0 : index
    %c0_14 = arith.constant 0 : index
    %14 = vector.load %arg16[%c0_13, %c0_14] : memref<1x128xf32, #tpu.memory_space<vmem>>, vector<1x128xf32>
    %15 = vector.broadcast %14 : vector<1x128xf32> to vector<8x128xf32>
    %16 = arith.addf %13, %15 : vector<8x128xf32>
    %cst_15 = arith.constant 0.000000e+00 : f32
    %17 = vector.broadcast %cst_15 : f32 to vector<8x128xf32>
    %18 = arith.maximumf %16, %17 : vector<8x128xf32>
    %c0_16 = arith.constant 0 : index
    %c0_17 = arith.constant 0 : index
    %19 = vector.load %arg17[%c0_16, %c0_17] : memref<128x128xf32, #tpu.memory_space<vmem>>, vector<128x128xf32>
    %cst_18 = arith.constant dense<0.000000e+00> : vector<8x128xf32>
    %20 = tpu.matmul %18, %19, %cst_18 {dimension_numbers = #tpu.dot_dimension_numbers<[1], [0], [0], [1], [0, 0, 1, 1], [], []>} : vector<8x128xf32>, vector<128x128xf32>, vector<8x128xf32> -> vector<8x128xf32>
    %c0_19 = arith.constant 0 : index
    %c0_20 = arith.constant 0 : index
    %21 = vector.load %arg18[%c0_19, %c0_20] : memref<1x128xf32, #tpu.memory_space<vmem>>, vector<1x128xf32>
    %22 = vector.broadcast %21 : vector<1x128xf32> to vector<8x128xf32>
    %23 = arith.addf %20, %22 : vector<8x128xf32>
    %cst_21 = arith.constant 0.000000e+00 : f32
    %24 = vector.broadcast %cst_21 : f32 to vector<8x128xf32>
    %25 = arith.maximumf %23, %24 : vector<8x128xf32>
    %c0_22 = arith.constant 0 : index
    %c0_23 = arith.constant 0 : index
    %26 = vector.load %arg19[%c0_22, %c0_23] : memref<8x128xf32, #tpu.memory_space<vmem>>, vector<8x128xf32>
    tpu.vector_store %arg19[%c0_22, %c0_23], %25 {strides = array<i32>} : memref<8x128xf32, #tpu.memory_space<vmem>>, vector<8x128xf32>,
    %27 = arith.truncf %25 : vector<8x128xf32> to vector<8x128xbf16>
    %c0_24 = arith.constant 0 : index
    %c0_25 = arith.constant 0 : index
    %28 = vector.load %arg21[%c0_24, %c0_25] : memref<16x128xf32, #tpu.memory_space<vmem>>, vector<16x128xf32>
    %cst_26 = arith.constant dense<0.000000e+00> : vector<16x128xf32>
    %29 = tpu.matmul %3, %27, %cst_26 {dimension_numbers = #tpu.dot_dimension_numbers<[0], [0], [1], [1], [0, 1, 1, 1], [], []>} : vector<8x16xbf16>, vector<8x128xbf16>, vector<16x128xf32> -> vector<16x128xf32>
    %30 = arith.addf %28, %29 : vector<16x128xf32>
    %c0_27 = arith.constant 0 : index
    %c0_28 = arith.constant 0 : index
    %31 = vector.load %arg21[%c0_27, %c0_28] : memref<16x128xf32, #tpu.memory_space<vmem>>, vector<16x128xf32>
    tpu.vector_store %arg21[%c0_27, %c0_28], %30 {strides = array<i32>} : memref<16x128xf32, #tpu.memory_space<vmem>>, vector<16x128xf32>,
    %c0_29 = arith.constant 0 : index
    %c0_30 = arith.constant 0 : index
    %32 = vector.load %arg22[%c0_29, %c0_30] : memref<16x128xf32, #tpu.memory_space<vmem>>, vector<16x128xf32>
    %cst_31 = arith.constant dense<0.000000e+00> : vector<16x128xf32>
    %33 = tpu.matmul %4, %27, %cst_31 {dimension_numbers = #tpu.dot_dimension_numbers<[0], [0], [1], [1], [0, 1, 1, 1], [], []>} : vector<8x16xbf16>, vector<8x128xbf16>, vector<16x128xf32> -> vector<16x128xf32>
    %34 = arith.addf %32, %33 : vector<16x128xf32>
    %c0_32 = arith.constant 0 : index
    %c0_33 = arith.constant 0 : index
    %35 = vector.load %arg22[%c0_32, %c0_33] : memref<16x128xf32, #tpu.memory_space<vmem>>, vector<16x128xf32>
    tpu.vector_store %arg22[%c0_32, %c0_33], %34 {strides = array<i32>} : memref<16x128xf32, #tpu.memory_space<vmem>>, vector<16x128xf32>,
    return
  }
  func.func @transform_0(%arg0: i32, %arg1: i32) -> (i32, i32) {
    %c0_i32 = arith.constant 0 : i32
    %c0_i32_0 = arith.constant 0 : i32
    %c0_i32_1 = arith.constant 0 : i32
    return %c0_i32, %c0_i32_0 : i32, i32
  }
  func.func @transform_1(%arg0: i32, %arg1: i32) -> (i32, i32) {
    %c0_i32 = arith.constant 0 : i32
    %c0_i32_0 = arith.constant 0 : i32
    return %arg1, %c0_i32 : i32, i32
  }
  func.func @transform_2(%arg0: i32, %arg1: i32) -> (i32, i32) {
    %c0_i32 = arith.constant 0 : i32
    %c0_i32_0 = arith.constant 0 : i32
    return %arg1, %c0_i32 : i32, i32
  }
  func.func @transform_3(%arg0: i32, %arg1: i32) -> (i32, i32) {
    %c0_i32 = arith.constant 0 : i32
    %c0_i32_0 = arith.constant 0 : i32
    %c0_i32_1 = arith.constant 0 : i32
    return %c0_i32, %c0_i32_0 : i32, i32
  }
  func.func @transform_4(%arg0: i32, %arg1: i32) -> (i32, i32) {
    %c0_i32 = arith.constant 0 : i32
    %c0_i32_0 = arith.constant 0 : i32
    %c0_i32_1 = arith.constant 0 : i32
    return %c0_i32, %c0_i32_0 : i32, i32
  }
  func.func @transform_5(%arg0: i32, %arg1: i32) -> (i32, i32) {
    %c0_i32 = arith.constant 0 : i32
    %c0_i32_0 = arith.constant 0 : i32
    %c0_i32_1 = arith.constant 0 : i32
    return %c0_i32, %c0_i32_0 : i32, i32
  }
  func.func @transform_6(%arg0: i32, %arg1: i32) -> (i32, i32) {
    %c0_i32 = arith.constant 0 : i32
    %c0_i32_0 = arith.constant 0 : i32
    %c0_i32_1 = arith.constant 0 : i32
    return %c0_i32, %c0_i32_0 : i32, i32
  }
  func.func @transform_7(%arg0: i32, %arg1: i32) -> (i32, i32) {
    %c0_i32 = arith.constant 0 : i32
    %c0_i32_0 = arith.constant 0 : i32
    %c0_i32_1 = arith.constant 0 : i32
    return %c0_i32, %c0_i32_0 : i32, i32
  }
  func.func @transform_8(%arg0: i32, %arg1: i32) -> (i32, i32) {
    %c0_i32 = arith.constant 0 : i32
    %c0_i32_0 = arith.constant 0 : i32
    %c0_i32_1 = arith.constant 0 : i32
    return %c0_i32, %c0_i32_0 : i32, i32
  }
  func.func @transform_9(%arg0: i32, %arg1: i32) -> (i32, i32) {
    %c0_i32 = arith.constant 0 : i32
    %c0_i32_0 = arith.constant 0 : i32
    %c0_i32_1 = arith.constant 0 : i32
    return %c0_i32, %c0_i32_0 : i32, i32
  }
  func.func @transform_10(%arg0: i32, %arg1: i32) -> (i32, i32) {
    %c0_i32 = arith.constant 0 : i32
    %c0_i32_0 = arith.constant 0 : i32
    %c0_i32_1 = arith.constant 0 : i32
    return %c0_i32, %c0_i32_0 : i32, i32
  }
  func.func @transform_11(%arg0: i32, %arg1: i32) -> (i32, i32) {
    %c0_i32 = arith.constant 0 : i32
    %c0_i32_0 = arith.constant 0 : i32
    %c0_i32_1 = arith.constant 0 : i32
    return %c0_i32, %c0_i32_0 : i32, i32
  }
  func.func @transform_12(%arg0: i32, %arg1: i32) -> (i32, i32) {
    %c0_i32 = arith.constant 0 : i32
    %c0_i32_0 = arith.constant 0 : i32
    %c0_i32_1 = arith.constant 0 : i32
    return %c0_i32, %c0_i32_0 : i32, i32
  }
  func.func @transform_13(%arg0: i32, %arg1: i32) -> (i32, i32) {
    %c0_i32 = arith.constant 0 : i32
    %c0_i32_0 = arith.constant 0 : i32
    %c0_i32_1 = arith.constant 0 : i32
    return %c0_i32, %c0_i32_0 : i32, i32
  }
  func.func @transform_14(%arg0: i32, %arg1: i32) -> (i32, i32) {
    %c0_i32 = arith.constant 0 : i32
    %c0_i32_0 = arith.constant 0 : i32
    %c0_i32_1 = arith.constant 0 : i32
    return %c0_i32, %c0_i32_0 : i32, i32
  }
  func.func @transform_15(%arg0: i32, %arg1: i32) -> (i32, i32) {
    %c0_i32 = arith.constant 0 : i32
    %c0_i32_0 = arith.constant 0 : i32
    %c0_i32_1 = arith.constant 0 : i32
    return %c0_i32, %c0_i32_0 : i32, i32
  }
  func.func @transform_16(%arg0: i32, %arg1: i32) -> (i32, i32) {
    %c0_i32 = arith.constant 0 : i32
    %c0_i32_0 = arith.constant 0 : i32
    %c0_i32_1 = arith.constant 0 : i32
    return %c0_i32, %c0_i32_0 : i32, i32
  }
  func.func @transform_17(%arg0: i32, %arg1: i32) -> (i32, i32) {
    %c0_i32 = arith.constant 0 : i32
    %c0_i32_0 = arith.constant 0 : i32
    return %arg1, %c0_i32 : i32, i32
  }
}

</mosaic_0001>

<bundles_post_ra>
// kernel: tpu_custom_call.1
= control target key start
LH: loop header
LB: loop body
LE: loop exit
PB: predicated region body
PF: predicated region fallthrough
CT: control target
= control target key end

     0   :  { %s3688_s0 = inlined_call_operand.vmem [shape: f32[16,128], index: 0, kind: input, shape index: {}]   ;;  %s3689_s1 = inlined_call_operand.vmem [shape: bf16[24,16], index: 1, kind: input, shape index: {}]   ;;  %s3690_s2 = inlined_call_operand.vmem [shape: bf16[24,16], index: 2, kind: input, shape index: {}]   ;;  %s3691_s3 = inlined_call_operand.hbm [shape: f32[128,128], index: 3, kind: input, shape index: {}]   ;;  %s3692_s4 = inlined_call_operand.vmem [shape: f32[1,128], index: 4, kind: input, shape index: {}]   ;;  %s3693_s5 = inlined_call_operand.hbm [shape: f32[128,128], index: 5, kind: input, shape index: {}]   ;;  %s3694_s6 = inlined_call_operand.vmem [shape: f32[1,128], index: 6, kind: input, shape index: {}]   ;;  %s3695_s7 = inlined_call_operand.hbm [shape: f32[128,128], index: 7, kind: input, shape index: {}]   ;;  %s3696_s8 = inlined_call_operand.hbm [shape: f32[128,128], index: 8, kind: input, shape index: {}]   ;;  %s3697_s9 = inlined_call_operand.vmem [shape: f32[1,128], index: 9, kind: input, shape index: {}]   ;;  %s3698_s10 = inlined_call_operand.hbm [shape: f32[128,128], index: 10, kind: input, shape index: {}]   ;;  %s3699_s11 = inlined_call_operand.vmem [shape: f32[1,128], index: 11, kind: input, shape index: {}]   ;;  %s3700_s12 = inlined_call_operand.hbm [shape: f32[128,128], index: 12, kind: input, shape index: {}]   ;;  %s3701_s13 = inlined_call_operand.hbm [shape: f32[128,128], index: 13, kind: input, shape index: {}]   ;;  %s3702_s14 = inlined_call_operand.vmem [shape: f32[1,128], index: 14, kind: input, shape index: {}]   ;;  %s3703_s15 = inlined_call_operand.hbm [shape: f32[128,128], index: 15, kind: input, shape index: {}]   ;;  %s3704_s16 = inlined_call_operand.vmem [shape: f32[1,128], index: 16, kind: input, shape index: {}]   ;;  %s3705_s17 = inlined_call_operand.hbm [shape: f32[24,128], index: 17, kind: output, shape index: {}]  }
   0x1   :  { %3722 = sst [smem:[#allocation36_spill]] %s3688_s0 }
   0x2   :  { %3723 = sst [smem:[#allocation37_spill]] %s3689_s1 }
   0x3   :  { %3724 = sst [smem:[#allocation38_spill]] %s3694_s6 }
   0x4   :  { %3725 = sst [smem:[#allocation39_spill]] %s3697_s9 }
   0x5   :  { %3726 = sst [smem:[#allocation40_spill]] %s3699_s11 }
   0x6   :  { %3727 = sst [smem:[#allocation41_spill]] %s3702_s14 }
   0x7   :  { %3728 = sst [smem:[#allocation42_spill]] %s3704_s16 }
   0x8   :  { %3729 = sst [smem:[#allocation43_spill]] %s3705_s17 }
   0x9   :  { %22 = vsyncpa [#allocation6], 0 }
   0xa   :  { %23 = vsyncpa [#allocation9], 0 }
   0xb   :  { %24 = vsyncpa [#allocation12], 0 }
   0xc   :  { %25 = vsyncpa [#allocation15], 0 }
   0xd   :  { %26 = vsyncpa [#allocation18], 0 }
   0xe   :  { %27 = vsyncpa [#allocation7], 0 }
   0xf   :  { %29 = vsyncpa [#allocation7 + $0x1], 0  ;;  %s3220_s24 = smov 0   ;;  %s3222_s25 = smov 0  }
  0x10   :  { %s3224_s26 = smov 0   ;;  %s3226_s27 = smov 0  }
  0x11   :  { %s3228_s28 = smov 0   ;;  %s3230_s29 = smov 0  }
  0x12   :  { %s3232_s0 = smov 0   ;;  %s3234_s30 = smov 0  }
  0x13 LB: > { %3730 = sst [smem:[#allocation26_spill]] %s3085_s24  ;;  %s1889_s18 = sadd.s32 4294967295, %s3113_s30   ;;  %s3113_s30 = sphi %s3234_s30, %s35_s30   ;;  %s3109_s0 = sphi %s3232_s0, %s3768_s0   ;;  %s3105_s29 = sphi %s3230_s29, %s3767_s29   ;;  %s3101_s28 = sphi %s3228_s28, %s3766_s28   ;;  %s3097_s27 = sphi %s3226_s27, %s3765_s27   ;;  %s3093_s26 = sphi %s3224_s26, %s3764_s26   ;;  %s3089_s25 = sphi %s3222_s25, %s3770_s25   ;;  %s3085_s24 = sphi %s3220_s24, %s3769_s24  }
  0x14   : > { %3731 = sst [smem:[#allocation27_spill]] %s3093_s26  ;;  %s1890_s19 = sadd.s32 4294967294, %s3113_s30  }
  0x15   : > { %3732 = sst [smem:[#allocation28_spill]] %s3105_s29  ;;  %s44_s1 = sadd.s32 1, %s3105_s29 }
  0x16   : > { %3733 = sst [smem:[#allocation29_spill]] %s3109_s0  ;;  %s47_s20 = sadd.s32 1, %s3109_s0 }
  0x17   : > { %3734 = sst [smem:[#allocation30_spill]] %s3113_s30  ;;  %p45_p0 = scmp.ge.s32.totalorder %s44_s1, 3 }
  0x18   : > { %s421_s21 = sadd.s32 1, %s3093_s26  ;;  %p431_p1 = scmp.ne.s32.totalorder %s3093_s26, %s3089_s25 }
  0x19   : > { %p432_p2 = scmp.eq.s32.totalorder %s1889_s18, 5  ;;  %s3772_s1 = smov (%p45_p0, %s44_s1), 0 }
  0x1a   : > { %3735 = sst [smem:[#allocation31_spill]] %s3772_s1  ;;  %s3774_s20 = smov (!%p45_p0, %s47_s20), %s3109_s0 }
  0x1b   : > { %s418_s22 = ssub.s32 %s3105_s29, %s3772_s1  ;;  %p3272_p3 = por %p432_p2, %p431_p1 }
  0x1c   : > { %p49_p4 = scmp.ge.s32.totalorder %s3774_s20, 2  ;;  %p419_p5 = scmp.eq.s32.totalorder %s418_s22, 0 }
  0x1d   : > { %s3736_s23 = scalar_select %p3272_p3, 1, 0 }
  0x1e   : > { %p437_p6 = scmp.ne.s32.totalorder %s3089_s25, %s3085_s24  ;;  %p438_p7 = scmp.eq.s32.totalorder %s1890_s19, 5 }
  0x1f   : > { %3737 = sst [smem:[#allocation32_spill]] %s3736_s23  ;;  %s3776_s20 = smov (%p49_p4, %s3774_s20), 0 }
  0x20   : > { %3738 = sst [smem:[#allocation33_spill]] %s3776_s20  ;;  %p3283_p8 = por %p438_p7, %p437_p6 }
  0x21   : > { %s3281_s17 = scalar_select %p419_p5, %s3093_s26, %s421_s21  }
  0x22   : > { %s3740_s16 = scalar_select %p3283_p8, 1, 0 }
  0x23   : > { %3739 = sst [smem:[#allocation34_spill]] %s3281_s17  ;;  %p1891_p9 = scmp.ge.s32.totalorder %s3113_s30, 1 }
  0x24   : > { %3741 = sst [smem:[#allocation35_spill]] %s3740_s16  ;;  %p445_p10 = scmp.lt.s32.totalorder %s3113_s30, 7 }
  0x25   : > { %p3289_p11 = scmp.eq.s32.totalorder %s1889_s18, 0  ;;  %s3115_s19 = smov [#allocation8]  }
  0x26   : > { %p3293_p12 = pnand %p1891_p9, %p445_p10  ;;  %s476_s21 = sshll.u32 %s3115_s19, 4  ;;  %s3299_s21 = int_to_ptr.vmem [resolvable:$true] %s476_s21 }
  0x27   : > { %s3742_s1 = scalar_select %p3289_p11, 1, 0 }
  0x28   : > { %s3743_s0 = scalar_select %p3293_p12, 1, 0 }
  0x29   : > { %p2650_p13 = pneg %p3293_p12  ;;  %s3116_s22 = smov [#allocation11]  }
  0x2a   : > { %s505_s20 = sshll.u32 %s3116_s22, 4  ;;  %s3117_s29 = smov [#allocation14]   ;;  %s3307_s20 = int_to_ptr.vmem [resolvable:$true] %s505_s20 }
  0x2b   : > { %p3303_p0 = pnand %p3289_p11, %p2650_p13  ;;  %s3309_s17 = sshll.u32 %s3117_s29, 4  ;;  %s538_s17 = int_to_ptr.vmem [resolvable:$true] %s3309_s17 }
  0x2c   : > { %s2775_s24 = scalar_lea.hbm %s3693_s5, 2048 }
  0x2d   : > { %p2776_p1 = scmp.ne.s32.totalorder %s3693_s5, %s2775_s24  ;;  %p3319_p2 = pneg %p3303_p0 }
  0x2e   : > { %p2782_p6 = scmp.lt.u32.totalorder %s2775_s24, %s3693_s5 }
  0x2f   : > { %p2778_p4 = pnand %p3319_p2, %p2776_p1 }
  0x31   : > { %p2779_p5 = pneg %p2778_p4 }
  0x33   : > { %p2784_p7 = pnand %p2782_p6, %p2779_p5 }
  0x35   : > { %2787 = shalt.err (!%p2784_p7)
}
  0x36   : > { %s2788_s16 = scalar_lea.vmem %s3299_s21, 2048  ;;  %p2796_p8 = scmp.lt.s32.totalorder %s3299_s21, %s3299_s21 }
  0x37   : > { %p2789_p9 = scmp.ne.s32.totalorder %s3299_s21, %s2788_s16  ;;  %p2797_p3 = scmp.lt.s32.totalorder %s2788_s16, %s2788_s16 }
  0x39   : > { %p2791_p10 = pnand %p2789_p9, %p3319_p2  ;;  %p2798_p1 = por %p2797_p3, %p2796_p8 }
  0x3b   : > { %p2792_p13 = pneg %p2791_p10 }
  0x3d   : > { %p2799_p4 = pnand %p2798_p1, %p2792_p13 }
  0x3f   : > { %2802 = shalt.err (!%p2799_p4)
}
  0x40   : > { %s3118_s26 = smov 128   ;;  %s3119_s24 = smov 8  }
  0x41   : > { %2656 = dma.hbm_to_vmem [thread:$0]  (!%p3303_p0), %s3693_s5, 2048, %s3299_s21, [#allocation9], %s3118_s26, %s3118_s26, %s3119_s24  }
  0x42   : > { %s2803_s16 = scalar_lea.hbm %s3696_s8, 2048 }
  0x43   : > { %p2804_p3 = scmp.ne.s32.totalorder %s3696_s8, %s2803_s16  ;;  %p2810_p6 = scmp.lt.u32.totalorder %s2803_s16, %s3696_s8 }
  0x45   : > { %p2806_p8 = pnand %p2804_p3, %p3319_p2 }
  0x47   : > { %p2807_p5 = pneg %p2806_p8 }
  0x49   : > { %p2812_p7 = pnand %p2810_p6, %p2807_p5 }
  0x4b   : > { %2815 = shalt.err (!%p2812_p7)
}
  0x4c   : > { %s2816_s21 = scalar_lea.vmem %s3307_s20, 2048  ;;  %p2824_p1 = scmp.lt.s32.totalorder %s3307_s20, %s3307_s20 }
  0x4d   : > { %p2817_p9 = scmp.ne.s32.totalorder %s3307_s20, %s2816_s21  ;;  %p2825_p4 = scmp.lt.s32.totalorder %s2816_s21, %s2816_s21 }
  0x4f   : > { %p2819_p10 = pnand %p2817_p9, %p3319_p2  ;;  %p2826_p3 = por %p2825_p4, %p2824_p1 }
  0x51   : > { %p2820_p13 = pneg %p2819_p10 }
  0x53   : > { %p2827_p8 = pnand %p2826_p3, %p2820_p13 }
  0x55   : > { %2830 = shalt.err (!%p2827_p8)
}
  0x56   : > { %2662 = dma.hbm_to_vmem [thread:$0]  (!%p3303_p0), %s3696_s8, 2048, %s3307_s20, [#allocation12], %s3118_s26, %s3118_s26, %s3119_s24  }
  0x57   : > { %s2831_s30 = scalar_lea.hbm %s3700_s12, 2048 }
  0x58   : > { %p2832_p5 = scmp.ne.s32.totalorder %s3700_s12, %s2831_s30  ;;  %p2838_p9 = scmp.lt.u32.totalorder %s2831_s30, %s3700_s12 }
  0x5a   : > { %p2834_p6 = pnand %p2832_p5, %p3319_p2 }
  0x5c   : > { %p2835_p7 = pneg %p2834_p6 }
  0x5e   : > { %p2840_p10 = pnand %p2838_p9, %p2835_p7 }
  0x60   : > { %2843 = shalt.err (!%p2840_p10)
}
  0x61   : > { %s2844_s21 = scalar_lea.vmem %s538_s17, 2048  ;;  %p2852_p3 = scmp.lt.s32.totalorder %s538_s17, %s538_s17 }
  0x62   : > { %p2845_p13 = scmp.ne.s32.totalorder %s538_s17, %s2844_s21  ;;  %p2853_p8 = scmp.lt.s32.totalorder %s2844_s21, %s2844_s21 }
  0x64   : > { %p2847_p1 = pnand %p2845_p13, %p3319_p2  ;;  %p2854_p11 = por %p2853_p8, %p2852_p3 }
  0x66   : > { %p2848_p4 = pneg %p2847_p1 }
  0x68   : > { %p2855_p12 = pnand %p2854_p11, %p2848_p4 }
  0x6a   : > { %2858 = shalt.err (!%p2855_p12)
}
  0x6b   : > { %2668 = dma.hbm_to_vmem [thread:$0]  (!%p3303_p0), %s3700_s12, 2048, %s538_s17, [#allocation15], %s3118_s26, %s3118_s26, %s3119_s24  }
  0x6c   : > { %s3120_s9 = smov [#allocation5]   ;;  %s3121_s14 = smov [#allocation10]  }
  0x6d   : > { %s460_s11 = sshll.u32 %s3120_s9, 4  ;;  %s492_s30 = sshll.u32 %s3121_s14, 4  ;;  %s461_s11 = int_to_ptr.vmem [resolvable:$true] %s460_s11  ;;  %s3391_s30 = int_to_ptr.vmem [resolvable:$true] %s492_s30 }
  0x6e   : > { %s2859_s29 = scalar_lea.hbm %s3691_s3, 2048 }
  0x6f   : > { %p2860_p11 = scmp.ne.s32.totalorder %s3691_s3, %s2859_s29  ;;  %p2866_p6 = scmp.lt.u32.totalorder %s2859_s29, %s3691_s3 }
  0x71   : > { %p2862_p12 = pnand %p2860_p11, %p3319_p2 }
  0x73   : > { %p2863_p5 = pneg %p2862_p12 }
  0x75   : > { %p2868_p7 = pnand %p2866_p6, %p2863_p5 }
  0x77   : > { %2871 = shalt.err (!%p2868_p7)
}
  0x78   : > { %s2872_s6 = scalar_lea.vmem %s461_s11, 2048  ;;  %p2880_p1 = scmp.lt.s32.totalorder %s461_s11, %s461_s11 }
  0x79   : > { %p2873_p9 = scmp.ne.s32.totalorder %s461_s11, %s2872_s6  ;;  %p2881_p4 = scmp.lt.s32.totalorder %s2872_s6, %s2872_s6 }
  0x7b   : > { %p2875_p10 = pnand %p2873_p9, %p3319_p2  ;;  %p2882_p3 = por %p2881_p4, %p2880_p1 }
  0x7d   : > { %p2876_p13 = pneg %p2875_p10 }
  0x7f   : > { %p2883_p8 = pnand %p2882_p3, %p2876_p13 }
  0x81   : > { %2886 = shalt.err (!%p2883_p8)
}
  0x82   : > { %2653 = dma.hbm_to_vmem [thread:$0]  (!%p3303_p0), %s3691_s3, 2048, %s461_s11, [#allocation6], %s3118_s26, %s3118_s26, %s3119_s24  }
  0x83   : > { %s2887_s29 = scalar_lea.hbm %s3695_s7, 2048 }
  0x84   : > { %p2888_p11 = scmp.ne.s32.totalorder %s3695_s7, %s2887_s29  ;;  %p2894_p6 = scmp.lt.u32.totalorder %s2887_s29, %s3695_s7 }
  0x86   : > { %p2890_p12 = pnand %p2888_p11, %p3319_p2 }
  0x88   : > { %p2891_p5 = pneg %p2890_p12 }
  0x8a   : > { %p2896_p7 = pnand %p2894_p6, %p2891_p5 }
  0x8c   : > { %2899 = shalt.err (!%p2896_p7)
}
  0x8d   : > { %s2900_s11 = scalar_lea.vmem %s3391_s30, 2048  ;;  %p2908_p1 = scmp.lt.s32.totalorder %s3391_s30, %s3391_s30 }
  0x8e   : > { %p2901_p9 = scmp.ne.s32.totalorder %s3391_s30, %s2900_s11  ;;  %p2909_p4 = scmp.lt.s32.totalorder %s2900_s11, %s2900_s11 }
  0x90   : > { %p2903_p10 = pnand %p2901_p9, %p3319_p2  ;;  %p2910_p3 = por %p2909_p4, %p2908_p1 }
  0x92   : > { %p2904_p13 = pneg %p2903_p10 }
  0x94   : > { %p2911_p8 = pnand %p2910_p3, %p2904_p13 }
  0x96   : > { %2914 = shalt.err (!%p2911_p8)
}
  0x97   : > { %2659 = dma.hbm_to_vmem [thread:$0]  (!%p3303_p0), %s3695_s7, 2048, %s3391_s30, [#allocation9], %s3118_s26, %s3118_s26, %s3119_s24  }
  0x98   : > { %s3122_s14 = smov [#allocation13]   ;;  %s3123_s19 = smov [#allocation16]  }
  0x99   : > { %s521_s23 = sshll.u32 %s3122_s14, 4  ;;  %s550_s29 = sshll.u32 %s3123_s19, 4  ;;  %s522_s23 = int_to_ptr.vmem [resolvable:$true] %s521_s23  ;;  %s3440_s29 = int_to_ptr.vmem [resolvable:$true] %s550_s29 }
  0x9a   : > { %s2915_s20 = scalar_lea.hbm %s3698_s10, 2048 }
  0x9b   : > { %p2916_p11 = scmp.ne.s32.totalorder %s3698_s10, %s2915_s20  ;;  %p2922_p6 = scmp.lt.u32.totalorder %s2915_s20, %s3698_s10 }
  0x9d   : > { %p2918_p12 = pnand %p2916_p11, %p3319_p2 }
  0x9f   : > { %p2919_p5 = pneg %p2918_p12 }
  0xa1   : > { %p2924_p7 = pnand %p2922_p6, %p2919_p5 }
  0xa3   : > { %2927 = shalt.err (!%p2924_p7)
}
  0xa4   : > { %s2928_s9 = scalar_lea.vmem %s522_s23, 2048  ;;  %p2936_p1 = scmp.lt.s32.totalorder %s522_s23, %s522_s23 }
  0xa5   : > { %p2929_p9 = scmp.ne.s32.totalorder %s522_s23, %s2928_s9  ;;  %p2937_p4 = scmp.lt.s32.totalorder %s2928_s9, %s2928_s9 }
  0xa7   : > { %p2931_p10 = pnand %p2929_p9, %p3319_p2  ;;  %p2938_p3 = por %p2937_p4, %p2936_p1 }
  0xa9   : > { %p2932_p13 = pneg %p2931_p10 }
  0xab   : > { %p2939_p8 = pnand %p2938_p3, %p2932_p13 }
  0xad   : > { %2942 = shalt.err (!%p2939_p8)
}
  0xae   : > { %2665 = dma.hbm_to_vmem [thread:$0]  (!%p3303_p0), %s3698_s10, 2048, %s522_s23, [#allocation12], %s3118_s26, %s3118_s26, %s3119_s24  }
  0xaf   : > { %s2943_s20 = scalar_lea.hbm %s3701_s13, 2048 }
  0xb0   : > { %p2944_p11 = scmp.ne.s32.totalorder %s3701_s13, %s2943_s20  ;;  %p2950_p6 = scmp.lt.u32.totalorder %s2943_s20, %s3701_s13 }
  0xb2   : > { %p2946_p12 = pnand %p2944_p11, %p3319_p2 }
  0xb4   : > { %p2947_p5 = pneg %p2946_p12 }
  0xb6   : > { %p2952_p7 = pnand %p2950_p6, %p2947_p5 }
  0xb8   : > { %2955 = shalt.err (!%p2952_p7)
}
  0xb9   : > { %s2956_s23 = scalar_lea.vmem %s3440_s29, 2048  ;;  %p2964_p1 = scmp.lt.s32.totalorder %s3440_s29, %s3440_s29 }
  0xba   : > { %p2957_p9 = scmp.ne.s32.totalorder %s3440_s29, %s2956_s23  ;;  %p2965_p4 = scmp.lt.s32.totalorder %s2956_s23, %s2956_s23 }
  0xbc   : > { %p2959_p10 = pnand %p2957_p9, %p3319_p2  ;;  %p2966_p3 = por %p2965_p4, %p2964_p1 }
  0xbe   : > { %p2960_p13 = pneg %p2959_p10 }
  0xc0   : > { %p2967_p8 = pnand %p2966_p3, %p2960_p13 }
  0xc2   : > { %2970 = shalt.err (!%p2967_p8)
}
  0xc3   : > { %2671 = dma.hbm_to_vmem [thread:$0]  (!%p3303_p0), %s3701_s13, 2048, %s3440_s29, [#allocation15], %s3118_s26, %s3118_s26, %s3119_s24  }
  0xc4   : > { %s3124_s19 = smov [#allocation17]   ;;  %s2971_s17 = scalar_lea.hbm %s3703_s15, 2048 }
  0xc5   : > { %s566_s16 = sshll.u32 %s3124_s19, 4  ;;  %p2972_p11 = scmp.ne.s32.totalorder %s3703_s15, %s2971_s17  ;;  %s567_s16 = int_to_ptr.vmem [resolvable:$true] %s566_s16 }
  0xc6   : > { %p2978_p6 = scmp.lt.u32.totalorder %s2971_s17, %s3703_s15 }
  0xc7   : > { %p2974_p12 = pnand %p2972_p11, %p3319_p2 }
  0xc9   : > { %p2975_p5 = pneg %p2974_p12 }
  0xcb   : > { %p2980_p7 = pnand %p2978_p6, %p2975_p5 }
  0xcd   : > { %2983 = shalt.err (!%p2980_p7)
}
  0xce   : > { %s2984_s29 = scalar_lea.vmem %s567_s16, 2048  ;;  %p2992_p1 = scmp.lt.s32.totalorder %s567_s16, %s567_s16 }
  0xcf   : > { %p2985_p9 = scmp.ne.s32.totalorder %s567_s16, %s2984_s29  ;;  %p2993_p4 = scmp.lt.s32.totalorder %s2984_s29, %s2984_s29 }
  0xd1   : > { %p2987_p10 = pnand %p2985_p9, %p3319_p2  ;;  %p2994_p3 = por %p2993_p4, %p2992_p1 }
  0xd3   : > { %p2988_p13 = pneg %p2987_p10 }
  0xd5   : > { %p2995_p8 = pnand %p2994_p3, %p2988_p13 }
  0xd7   : > { %2998 = shalt.err (!%p2995_p8)
}
  0xd8   : > { %2674 = dma.hbm_to_vmem [thread:$0]  (!%p3303_p0), %s3703_s15, 2048, %s567_s16, [#allocation18], %s3118_s26, %s3118_s26, %s3119_s24  }
  0xd9   : > { %p3746_p11 = scmp.ne.s32.totalorder %s3743_s0, 0 }
  0xda   : > { %p3747_p2 = scmp.ne.s32.totalorder (!%p3746_p11), %s3742_s1, 0 }
  0xdb   : > { %599 = sbr.rel (%p3746_p11) target bundleno = 1901 (0x76d), region = 88 }
  0xe2   : > { %3060 = dma.done.wait (%p3747_p2), [#allocation6], 2048  }
  0xe3   : > { %3062 = vsyncadd (%p3747_p2), [#allocation6], 4294965248 }
  0xe4   : > { %3064 = dma.done.wait (%p3747_p2), [#allocation9], 4096  }
  0xe5   : > { %3066 = vsyncadd (%p3747_p2), [#allocation9], 4294963200 }
  0xe6   : > { %3068 = dma.done.wait (%p3747_p2), [#allocation12], 4096  }
  0xe7   : > { %3070 = vsyncadd (%p3747_p2), [#allocation12], 4294963200 }
  0xe8   : > { %3072 = dma.done.wait (%p3747_p2), [#allocation15], 4096  }
  0xe9   : > { %3074 = vsyncadd (%p3747_p2), [#allocation15], 4294963200 }
  0xea   : > { %3076 = dma.done.wait (%p3747_p2), [#allocation18], 2048  }
  0xeb   : > { %3078 = vsyncadd (%p3747_p2), [#allocation18], 4294965248  ;;  %s679_s0 = sand.u32 1, %s3089_s25   ;;  %p682_p0 = scmp.lt.s32.totalorder %s3097_s27, 2 }
  0xec   : > { %s3536_s18 = sshll.u32 %s679_s0, 3  ;;  %s3748_s16 = sld [smem:[#allocation37_spill]] }
  0xed   : > { %s683_s22 = scalar_select %p682_p0, %s3097_s27, 2 }
  0xee   : > { %s681_s11 = scalar_lea.vmem [#allocation19], %s3536_s18  ;;  %p1913_p12 = scmp.ne.s32.totalorder %s3097_s27, 0 }
  0xef   : > { %s1911_s26 = sshll.u32 %s683_s22, 2  ;;  %p1914_p5 = scmp.ne.s32.totalorder (!%p1913_p12), %s3101_s28, 0 }
  0xf0   : > { %s3547_s17 = scalar_lea.vmem %s3690_s2, %s1911_s26  ;;  %694 = sbr.rel (%p1913_p12) target bundleno = 1004 (0x3ec), region = 124 }
  0xf2   : > { %s3542_s21 = scalar_lea.vmem %s3748_s16, %s1911_s26 }
  0xf7   : > { %698 = sbr.rel (%p1914_p5) target bundleno = 501 (0x1f5), region = 128  ;;  %v701_v0 = vld [vmem:[#allocation5] sm:$0xff] (!%p1914_p5)  ;;  %v702_v1 = vld [vmem:[#allocation5 + $0x8] sm:$0xff] (!%p1914_p5)  ;;  %v703_v5 = vld [vmem:[#allocation5 + $0x10] sm:$0xff] (!%p1914_p5)  ;;  %s3749_s30 = sld [smem:[#allocation36_spill]] (!%p1914_p5) }
  0xf8   : > { %v803_v2 = vld [vmem:[#allocation8] sm:$0xff] (!%p1914_p5)  ;;  %v2382_v3 = vpack.c.bf16 (!%p1914_p5), %v702_v1, %v701_v0  ;;  %v804_v4 = vld [vmem:[#allocation8 + $0x8] sm:$0xff] (!%p1914_p5)  ;;  %v704_v6 = vld [vmem:[#allocation5 + $0x18] sm:$0xff] (!%p1914_p5)  ;;  %s3751_s19 = sld [smem:[#allocation38_spill]] (!%p1914_p5) }
  0xf9   : > { %v2414_v7 = vpack.c.bf16 (!%p1914_p5), %v804_v4, %v803_v2  ;;  %v2386_v8 = vpack.c.bf16 (!%p1914_p5), %v704_v6, %v703_v5  ;;  %v805_v9 = vld [vmem:[#allocation8 + $0x10] sm:$0xff] (!%p1914_p5)  ;;  %v806_v10 = vld [vmem:[#allocation8 + $0x18] sm:$0xff] (!%p1914_p5)  ;;  %v705_v11 = vld [vmem:[#allocation5 + $0x20] sm:$0xff] (!%p1914_p5) }
  0xfa   : > { %2383 = vmatprep.subr.bf16.mxu0 (!%p1914_p5), %v2382_v3  ;;  %v2418_v12 = vpack.c.bf16 (!%p1914_p5), %v806_v10, %v805_v9  ;;  %v706_v13 = vld [vmem:[#allocation5 + $0x28] sm:$0xff] (!%p1914_p5)  ;;  %v807_v14 = vld [vmem:[#allocation8 + $0x20] sm:$0xff] (!%p1914_p5)  ;;  %v707_v18 = vld [vmem:[#allocation5 + $0x30] sm:$0xff] (!%p1914_p5) }
  0xfb   : > { %v808_v15 = vld [vmem:[#allocation8 + $0x28] sm:$0xff] (!%p1914_p5)  ;;  %2415 = vmatprep.subr.bf16.mxu1 (!%p1914_p5), %v2414_v7  ;;  %2385 = vmatpush3.bf16.msra.mxu0 (!%p1914_p5), %v2382_v3  ;;  %v2390_v16 = vpack.c.bf16 (!%p1914_p5), %v706_v13, %v705_v11  ;;  %v708_v19 = vld [vmem:[#allocation5 + $0x38] sm:$0xff] (!%p1914_p5)  ;;  %v809_v20 = vld [vmem:[#allocation8 + $0x30] sm:$0xff] (!%p1914_p5) }
  0xfc   : > { %2417 = vmatpush3.bf16.msra.mxu1 (!%p1914_p5), %v2414_v7  ;;  %2387 = vmatprep.subr.bf16.mxu0 (!%p1914_p5), %v2386_v8  ;;  %v2422_v17 = vpack.c.bf16 (!%p1914_p5), %v808_v15, %v807_v14  ;;  %v810_v21 = vld [vmem:[#allocation8 + $0x38] sm:$0xff] (!%p1914_p5)  ;;  %v2394_v22 = vpack.c.bf16 (!%p1914_p5), %v708_v19, %v707_v18  ;;  %v709_v24 = vld [vmem:[#allocation5 + $0x40] sm:$0xff] (!%p1914_p5)  ;;  %v710_v25 = vld [vmem:[#allocation5 + $0x48] sm:$0xff] (!%p1914_p5) }
  0xfd   : > { %2419 = vmatprep.subr.bf16.mxu1 (!%p1914_p5), %v2418_v12  ;;  %v2426_v23 = vpack.c.bf16 (!%p1914_p5), %v810_v21, %v809_v20  ;;  %s3750_s23 = smov (!%p1914_p5), %s3749_s30  ;;  %v699_v26 = vld [vmem:[%s3749_s30] sm:$0xff] (!%p1914_p5)  ;;  %v811_v27 = vld [vmem:[#allocation8 + $0x40] sm:$0xff] (!%p1914_p5)  ;;  %v812_v28 = vld [vmem:[#allocation8 + $0x48] sm:$0xff] (!%p1914_p5)  ;;  %v2398_v29 = vpack.c.bf16 (!%p1914_p5), %v710_v25, %v709_v24 }
  0xfe   : > { %2110 = vmatprep.mubr.f32.mxu0 %v699_v26  ;;  %2145 = vmatprep.mubr.f32.mxu1 %v699_v26  ;;  %v2430_v30 = vpack.c.bf16 %v812_v28, %v811_v27  ;;  %v711_v31 = vld [vmem:[#allocation5 + $0x50] sm:$0xff]  ;;  %v712_v32 = vld [vmem:[#allocation5 + $0x58] sm:$0xff]  ;;  %v713_v37 = vld [vmem:[#allocation5 + $0x60] sm:$0xff] }
  0xff   : > { %2389 = vmatpush3.bf16.msra.mxu0 %v2386_v8  ;;  %v813_v33 = vld [vmem:[#allocation8 + $0x50] sm:$0xff]  ;;  %v814_v34 = vld [vmem:[#allocation8 + $0x58] sm:$0xff]  ;;  %v2402_v35 = vpack.c.bf16 %v712_v32, %v711_v31  ;;  %v714_v38 = vld [vmem:[#allocation5 + $0x68] sm:$0xff] }
 0x100   : > { %2421 = vmatpush3.bf16.msra.mxu1 %v2418_v12  ;;  %2391 = vmatprep.subr.bf16.mxu0 %v2390_v16  ;;  %v2434_v36 = vpack.c.bf16 %v814_v34, %v813_v33  ;;  %v815_v39 = vld [vmem:[#allocation8 + $0x60] sm:$0xff]  ;;  %v816_v40 = vld [vmem:[#allocation8 + $0x68] sm:$0xff]  ;;  %v2406_v41 = vpack.c.bf16 %v714_v38, %v713_v37  ;;  %v715_v43 = vld [vmem:[#allocation5 + $0x70] sm:$0xff] }
 0x101   : > { %2423 = vmatprep.subr.bf16.mxu1 %v2422_v17  ;;  %v2438_v42 = vpack.c.bf16 %v816_v40, %v815_v39  ;;  %v716_v44 = vld [vmem:[#allocation5 + $0x78] sm:$0xff]  ;;  %v817_v45 = vld [vmem:[#allocation8 + $0x70] sm:$0xff] }
 0x102   : > { %v818_v46 = vld [vmem:[#allocation8 + $0x78] sm:$0xff]  ;;  %v2410_v47 = vpack.c.bf16 %v716_v44, %v715_v43  ;;  %v1915_v50 = vld [vmem:[%s3692_s4] ss:$0 sm:$0xff] }
 0x103   : > { %2393 = vmatpush3.bf16.msra.mxu0 %v2390_v16  ;;  %v2442_v48 = vpack.c.bf16 %v818_v46, %v817_v45  ;;  %v700_v49 = vld [vmem:[%s3750_s23 + $0x8] sm:$0xff]  ;;  %v1916_v51 = vld [vmem:[%s3751_s19] ss:$0 sm:$0xff] }
 0x104   : > { %2425 = vmatpush3.bf16.msra.mxu1 %v2422_v17  ;;  %2395 = vmatprep.subr.bf16.mxu0 %v2394_v22 }
 0x105   : > { %2427 = vmatprep.subr.bf16.mxu1 %v2426_v23 }
 0x107   : > { %2397 = vmatpush3.bf16.msra.mxu0 %v2394_v22 }
 0x108   : > { %2429 = vmatpush3.bf16.msra.mxu1 %v2426_v23  ;;  %2399 = vmatprep.subr.bf16.mxu0 %v2398_v29 }
 0x109   : > { %2431 = vmatprep.subr.bf16.mxu1 %v2430_v30 }
 0x10b   : > { %2401 = vmatpush3.bf16.msra.mxu0 %v2398_v29 }
 0x10c   : > { %2433 = vmatpush3.bf16.msra.mxu1 %v2430_v30  ;;  %2403 = vmatprep.subr.bf16.mxu0 %v2402_v35 }
 0x10d   : > { %2435 = vmatprep.subr.bf16.mxu1 %v2434_v36 }
 0x10f   : > { %2405 = vmatpush3.bf16.msra.mxu0 %v2402_v35 }
 0x110   : > { %2437 = vmatpush3.bf16.msra.mxu1 %v2434_v36  ;;  %2407 = vmatprep.subr.bf16.mxu0 %v2406_v41 }
 0x111   : > { %2439 = vmatprep.subr.bf16.mxu1 %v2438_v42 }
 0x113   : > { %2409 = vmatpush3.bf16.msra.mxu0 %v2406_v41 }
 0x114   : > { %2441 = vmatpush3.bf16.msra.mxu1 %v2438_v42  ;;  %2411 = vmatprep.subr.bf16.mxu0 %v2410_v47 }
 0x115   : > { %2443 = vmatprep.subr.bf16.mxu1 %v2442_v48 }
 0x117   : > { %2413 = vmatpush3.bf16.msra.mxu0 %v2410_v47 }
 0x118   : > { %2445 = vmatpush3.bf16.msra.mxu1 %v2442_v48 }
 0x11a   : > { %2111 = vmatmul.mubr.f32.vlgmr.msra.gmra.mrb[0].mxu0 %v700_v49 }
 0x11b   : > { %2146 = vmatmul.mubr.f32.vlgmr.msra.gmra.mrb[0].mxu1 %v700_v49 }
 0x1ed   : > { %v2112_v52 = vpop.f32.mrb[0].mxu0 }
 0x1ee   : > { %v796_v53 = vadd.f32 %v2112_v52, %v1915_v50  ;;  %v2147_v54 = vpop.f32.mrb[0].mxu1  ;;  %v790_v55 = vpop.f32.mrb[1].mxu0 }
 0x1ef   : > { %v898_v56 = vadd.f32 %v2147_v54, %v1916_v51  ;;  %v791_v57 = vadd.f32 %v1915_v50, %v790_v55  ;;  %v892_v58 = vpop.f32.mrb[1].mxu1 }
 0x1f0   : > { %v800_v59 = vmax.f32 %v796_v53, 0.0  ;;  %v893_v60 = vadd.f32 %v1916_v51, %v892_v58 }
 0x1f1   : > { %v902_v61 = vmax.f32 %v898_v56, 0.0  ;;  %v799_v62 = vmax.f32 %v791_v57, 0.0 }
 0x1f2   : > { %802 = vst [vmem:[#allocation3 + $0x8] sm:$0xff] %v800_v59  ;;  %v901_v63 = vmax.f32 %v893_v60, 0.0 }
 0x1f3   : > { %904 = vst [vmem:[#allocation4 + $0x8] sm:$0xff] %v902_v61  ;;  %801 = vst [vmem:[#allocation3] sm:$0xff] %v799_v62 }
 0x1f4   : > { %903 = vst [vmem:[#allocation4] sm:$0xff] %v901_v63 }
 0x1f5 PF: > { %v925_v0 = vld [vmem:[#allocation11] sm:$0xff]  ;;  %v926_v1 = vld [vmem:[#allocation11 + $0x8] sm:$0xff]  ;;  %v927_v2 = vld [vmem:[#allocation11 + $0x10] sm:$0xff]  ;;  %v3125_v12 = vmov 0.0   ;;  %s3752_s1 = sld [smem:[#allocation39_spill]]  ;;  %s3753_s30 = sld [smem:[#allocation40_spill]] }
 0x1f6   : > { %v2446_v3 = vpack.c.bf16 %v926_v1, %v925_v0  ;;  %v928_v4 = vld [vmem:[#allocation11 + $0x18] sm:$0xff]  ;;  %v929_v6 = vld [vmem:[#allocation11 + $0x20] sm:$0xff]  ;;  %v930_v7 = vld [vmem:[#allocation11 + $0x28] sm:$0xff] }
 0x1f7   : > { %v2450_v5 = vpack.c.bf16 %v928_v4, %v927_v2  ;;  %v2454_v8 = vpack.c.bf16 %v930_v7, %v929_v6  ;;  %v931_v10 = vld [vmem:[#allocation11 + $0x30] sm:$0xff]  ;;  %v932_v11 = vld [vmem:[#allocation11 + $0x38] sm:$0xff]  ;;  %v933_v15 = vld [vmem:[#allocation11 + $0x40] sm:$0xff] }
 0x1f8   : > { %2447 = vmatprep.subr.bf16.mxu0 %v2446_v3  ;;  %v2458_v14 = vpack.c.bf16 %v932_v11, %v931_v10  ;;  %v934_v16 = vld [vmem:[#allocation11 + $0x48] sm:$0xff]  ;;  %v1102_v19 = vld [vmem:[#allocation13] sm:$0xff]  ;;  %v1104_v21 = vld [vmem:[#allocation13 + $0x10] sm:$0xff] }
 0x1f9   : > { %2449 = vmatpush3.bf16.msra.mxu0 %v2446_v3  ;;  %v3568_v18 = vld [vmem:[#allocation3 + $0x8] sm:$0xff]  ;;  %v2462_v22 = vpack.c.bf16 %v934_v16, %v933_v15  ;;  %v935_v23 = vld [vmem:[#allocation11 + $0x50] sm:$0xff]  ;;  %v1105_v25 = vld [vmem:[#allocation13 + $0x18] sm:$0xff] }
 0x1fa   : > { %2451 = vmatprep.subr.bf16.mxu0 %v2450_v5  ;;  %v3564_v13 = vld [vmem:[#allocation4 + $0x8] sm:$0xff]  ;;  %v3566_v17 = vld [vmem:[#allocation3] sm:$0xff]  ;;  %1205 = vst [vmem:[#allocation3 + $0x8] sm:$0xff] %v3125_v12  ;;  %v1103_v20 = vld [vmem:[#allocation13 + $0x8] sm:$0xff]  ;;  %v2514_v27 = vpack.c.bf16 %v1105_v25, %v1104_v21 }
 0x1fb   : > { %v923_v9 = vld [vmem:[#allocation4] sm:$0xff]  ;;  %1207 = vst [vmem:[#allocation4 + $0x8] sm:$0xff] %v3125_v12  ;;  %1204 = vst [vmem:[#allocation3] sm:$0xff] %v3125_v12  ;;  %v2510_v24 = vpack.c.bf16 %v1103_v20, %v1102_v19  ;;  %v936_v26 = vld [vmem:[#allocation11 + $0x58] sm:$0xff] }
 0x1fc   : > { %2180 = vmatprep.mubr.f32.mxu0 %v923_v9  ;;  %1206 = vst [vmem:[#allocation4] sm:$0xff] %v3125_v12  ;;  %v1106_v28 = vld [vmem:[#allocation13 + $0x20] sm:$0xff]  ;;  %v1107_v29 = vld [vmem:[#allocation13 + $0x28] sm:$0xff]  ;;  %v2466_v30 = vpack.c.bf16 %v936_v26, %v935_v23  ;;  %v1108_v34 = vld [vmem:[#allocation13 + $0x30] sm:$0xff] }
 0x1fd   : > { %2453 = vmatpush3.bf16.msra.mxu0 %v2450_v5  ;;  %2511 = vmatprep.subr.bf16.mxu1 %v2510_v24  ;;  %v937_v31 = vld [vmem:[#allocation11 + $0x60] sm:$0xff]  ;;  %v2518_v32 = vpack.c.bf16 %v1107_v29, %v1106_v28  ;;  %v938_v33 = vld [vmem:[#allocation11 + $0x68] sm:$0xff]  ;;  %v1109_v35 = vld [vmem:[#allocation13 + $0x38] sm:$0xff] }
 0x1fe   : > { %2455 = vmatprep.subr.bf16.mxu0 %v2454_v8  ;;  %2513 = vmatpush3.bf16.msra.mxu1 %v2510_v24  ;;  %v2470_v36 = vpack.c.bf16 %v938_v33, %v937_v31  ;;  %v939_v37 = vld [vmem:[#allocation11 + $0x70] sm:$0xff]  ;;  %v2522_v38 = vpack.c.bf16 %v1109_v35, %v1108_v34  ;;  %v940_v39 = vld [vmem:[#allocation11 + $0x78] sm:$0xff]  ;;  %v1110_v40 = vld [vmem:[#allocation13 + $0x40] sm:$0xff] }
 0x1ff   : > { %2515 = vmatprep.subr.bf16.mxu1 %v2514_v27  ;;  %v1111_v41 = vld [vmem:[#allocation13 + $0x48] sm:$0xff]  ;;  %v2474_v42 = vpack.c.bf16 %v940_v39, %v939_v37  ;;  %v907_v43 = vld [vmem:[#allocation10] sm:$0xff]  ;;  %v1112_v46 = vld [vmem:[#allocation13 + $0x50] sm:$0xff] }
 0x200   : > { %v2526_v44 = vpack.c.bf16 %v1111_v41, %v1110_v40  ;;  %v908_v45 = vld [vmem:[#allocation10 + $0x8] sm:$0xff]  ;;  %v1113_v47 = vld [vmem:[#allocation13 + $0x58] sm:$0xff]  ;;  %v909_v50 = vld [vmem:[#allocation10 + $0x10] sm:$0xff] }
 0x201   : > { %2457 = vmatpush3.bf16.msra.mxu0 %v2454_v8  ;;  %v2478_v48 = vpack.c.bf16 %v908_v45, %v907_v43  ;;  %v2530_v49 = vpack.c.bf16 %v1113_v47, %v1112_v46  ;;  %v910_v51 = vld [vmem:[#allocation10 + $0x18] sm:$0xff]  ;;  %v1114_v52 = vld [vmem:[#allocation13 + $0x60] sm:$0xff]  ;;  %v1115_v53 = vld [vmem:[#allocation13 + $0x68] sm:$0xff] }
 0x202   : > { %2459 = vmatprep.subr.bf16.mxu0 %v2458_v14  ;;  %2517 = vmatpush3.bf16.msra.mxu1 %v2514_v27  ;;  %v2482_v54 = vpack.c.bf16 %v910_v51, %v909_v50  ;;  %v911_v55 = vld [vmem:[#allocation10 + $0x20] sm:$0xff]  ;;  %v912_v56 = vld [vmem:[#allocation10 + $0x28] sm:$0xff]  ;;  %v2534_v57 = vpack.c.bf16 %v1115_v53, %v1114_v52  ;;  %v913_v59 = vld [vmem:[#allocation10 + $0x30] sm:$0xff] }
 0x203   : > { %2519 = vmatprep.subr.bf16.mxu1 %v2518_v32  ;;  %v2486_v58 = vpack.c.bf16 %v912_v56, %v911_v55  ;;  %v914_v60 = vld [vmem:[#allocation10 + $0x38] sm:$0xff]  ;;  %v915_v62 = vld [vmem:[#allocation10 + $0x40] sm:$0xff]  ;;  %v916_v63 = vld [vmem:[#allocation10 + $0x48] sm:$0xff] }
 0x204   : > { %v2490_v61 = vpack.c.bf16 %v914_v60, %v913_v59  ;;  %v2494_v0 = vpack.c.bf16 %v916_v63, %v915_v62  ;;  %v917_v1 = vld [vmem:[#allocation10 + $0x50] sm:$0xff]  ;;  %v918_v2 = vld [vmem:[#allocation10 + $0x58] sm:$0xff]  ;;  %v919_v4 = vld [vmem:[#allocation10 + $0x60] sm:$0xff] }
 0x205   : > { %2461 = vmatpush3.bf16.msra.mxu0 %v2458_v14  ;;  %v2498_v3 = vpack.c.bf16 %v918_v2, %v917_v1  ;;  %v920_v5 = vld [vmem:[#allocation10 + $0x68] sm:$0xff]  ;;  %v921_v7 = vld [vmem:[#allocation10 + $0x70] sm:$0xff]  ;;  %v922_v8 = vld [vmem:[#allocation10 + $0x78] sm:$0xff] }
 0x206   : > { %2463 = vmatprep.subr.bf16.mxu0 %v2462_v22  ;;  %2521 = vmatpush3.bf16.msra.mxu1 %v2518_v32  ;;  %v2502_v6 = vpack.c.bf16 %v920_v5, %v919_v4  ;;  %v2506_v9 = vpack.c.bf16 %v922_v8, %v921_v7  ;;  %v1116_v10 = vld [vmem:[#allocation13 + $0x70] sm:$0xff]  ;;  %v1117_v11 = vld [vmem:[#allocation13 + $0x78] sm:$0xff] }
 0x207   : > { %2523 = vmatprep.subr.bf16.mxu1 %v2522_v38  ;;  %v2538_v12 = vpack.c.bf16 %v1117_v11, %v1116_v10 }
 0x209   : > { %2465 = vmatpush3.bf16.msra.mxu0 %v2462_v22 }
 0x20a   : > { %2467 = vmatprep.subr.bf16.mxu0 %v2466_v30  ;;  %2525 = vmatpush3.bf16.msra.mxu1 %v2522_v38 }
 0x20b   : > { %2527 = vmatprep.subr.bf16.mxu1 %v2526_v44 }
 0x20d   : > { %2469 = vmatpush3.bf16.msra.mxu0 %v2466_v30 }
 0x20e   : > { %2471 = vmatprep.subr.bf16.mxu0 %v2470_v36  ;;  %2529 = vmatpush3.bf16.msra.mxu1 %v2526_v44 }
 0x20f   : > { %2531 = vmatprep.subr.bf16.mxu1 %v2530_v49 }
 0x211   : > { %2473 = vmatpush3.bf16.msra.mxu0 %v2470_v36 }
 0x212   : > { %2475 = vmatprep.subr.bf16.mxu0 %v2474_v42  ;;  %2533 = vmatpush3.bf16.msra.mxu1 %v2530_v49 }
 0x213   : > { %2535 = vmatprep.subr.bf16.mxu1 %v2534_v57 }
 0x215   : > { %2477 = vmatpush3.bf16.msra.mxu0 %v2474_v42 }
 0x216   : > { %2479 = vmatprep.subr.bf16.mxu0 %v2478_v48  ;;  %2537 = vmatpush3.bf16.msra.mxu1 %v2534_v57 }
 0x217   : > { %2539 = vmatprep.subr.bf16.mxu1 %v2538_v12 }
 0x218   : > { %2181 = vmatmul.mubr.f32.vlgmr.msra.gmra.mrb[0].mxu0 %v3564_v13  ;;  %v1917_v13 = vld [vmem:[%s3752_s1] ss:$0 sm:$0xff] }
 0x219   : > { %2481 = vmatpush3.bf16.msra.mxu0 %v2478_v48  ;;  %2215 = vmatprep.mubr.f32.mxu0 %v3566_v17 }
 0x21a   : > { %2483 = vmatprep.subr.bf16.mxu0 %v2482_v54  ;;  %2541 = vmatpush3.bf16.msra.mxu1 %v2538_v12 }
 0x21d   : > { %2485 = vmatpush3.bf16.msra.mxu0 %v2482_v54 }
 0x21e   : > { %2487 = vmatprep.subr.bf16.mxu0 %v2486_v58 }
 0x221   : > { %2489 = vmatpush3.bf16.msra.mxu0 %v2486_v58 }
 0x222   : > { %2491 = vmatprep.subr.bf16.mxu0 %v2490_v61 }
 0x225   : > { %2493 = vmatpush3.bf16.msra.mxu0 %v2490_v61 }
 0x226   : > { %2495 = vmatprep.subr.bf16.mxu0 %v2494_v0 }
 0x229   : > { %2497 = vmatpush3.bf16.msra.mxu0 %v2494_v0 }
 0x22a   : > { %2499 = vmatprep.subr.bf16.mxu0 %v2498_v3 }
 0x22d   : > { %2501 = vmatpush3.bf16.msra.mxu0 %v2498_v3 }
 0x22e   : > { %2503 = vmatprep.subr.bf16.mxu0 %v2502_v6 }
 0x231   : > { %2505 = vmatpush3.bf16.msra.mxu0 %v2502_v6 }
 0x232   : > { %2507 = vmatprep.subr.bf16.mxu0 %v2506_v9 }
 0x235   : > { %2509 = vmatpush3.bf16.msra.mxu0 %v2506_v9 }
 0x238   : > { %2216 = vmatmul.mubr.f32.vlgmr.msra.gmra.mrb[0].mxu0 %v3568_v18  ;;  %v1918_v18 = vld [vmem:[%s3753_s30] ss:$0 sm:$0xff] }
 0x30b   : > { %v2217_v14 = vpop.f32.mrb[0].mxu0 }
 0x30c   : > { %v1099_v15 = vadd.f32 %v2217_v14, %v1917_v13  ;;  %v1082_v16 = vpop.f32.mrb[1].mxu0 }
 0x30d   : > { %v1098_v17 = vadd.f32 %v1917_v13, %v1082_v16 }
 0x30e   : > { %v1101_v20 = vmax.f32 %v1099_v15, 0.0 }
 0x30f   : > { %v1100_v19 = vmax.f32 %v1098_v17, 0.0 }
 0x311   : > { %2250 = vmatprep.mubr.f32.mxu1 %v1100_v19 }
 0x312   : > { %2251 = vmatmul.mubr.f32.vlgmr.msra.gmra.mrb[0].mxu1 %v1101_v20 }
 0x3e5   : > { %v2252_v21 = vpop.f32.mrb[0].mxu1 }
 0x3e6   : > { %v1197_v22 = vadd.f32 %v2252_v21, %v1918_v18  ;;  %v1191_v23 = vpop.f32.mrb[1].mxu1 }
 0x3e7   : > { %v1192_v24 = vadd.f32 %v1918_v18, %v1191_v23 }
 0x3e8   : > { %v1201_v25 = vmax.f32 %v1197_v22, 0.0 }
 0x3e9   : > { %v1200_v26 = vmax.f32 %v1192_v24, 0.0 }
 0x3ea   : > { %1203 = vst [vmem:[#allocation2 + $0x8] sm:$0xff] %v1201_v25 }
 0x3eb   : > { %1202 = vst [vmem:[#allocation2] sm:$0xff] %v1200_v26 }
 0x3ec PF: > { %v3126_v29 = vmov 0.0   ;;  %vm3127_vm0 = vmmov 0   ;;  %v1208_v31 = vld [vmem:[%s3542_s21] sm:$0xf]  ;;  %v3128_v32 = vmov 0.0|0.0   ;;  %v1316_v33 = vld [vmem:[#allocation16] sm:$0xff] }
 0x3ed   : > { %2253 = vmatprep.subr.bf16.mxu1 %v3126_v29  ;;  %2255 = vmatprep.mubr.msk.bf16.mxu1 %vm3127_vm0, %v3126_v29  ;;  %vm1213_vm1 = vcmask 130048   ;;  %v1317_v34 = vld [vmem:[#allocation16 + $0x8] sm:$0xff]  ;;  %v1318_v36 = vld [vmem:[#allocation16 + $0x10] sm:$0xff]  ;;  %v1319_v37 = vld [vmem:[#allocation16 + $0x18] sm:$0xff]  ;;  %s3754_s29 = sld [smem:[#allocation41_spill]]  ;;  %s3755_s22 = sld [smem:[#allocation42_spill]] }
 0x3ee   : > { %2542 = vmatprep.subr.bf16.mxu0 %v3128_v32  ;;  %2297 = vmatprep.mubr.msk.f32.mxu0 %vm3127_vm0, %v3126_v29  ;;  %v2543_v35 = vpack.c.bf16 %v1317_v34, %v1316_v33  ;;  %v2546_v38 = vpack.c.bf16 %v1319_v37, %v1318_v36  ;;  %v1320_v39 = vld [vmem:[#allocation16 + $0x20] sm:$0xff]  ;;  %v1321_v40 = vld [vmem:[#allocation16 + $0x28] sm:$0xff]  ;;  %v1209_v41 = vld [vmem:[%s3547_s17] sm:$0xf]  ;;  %vm1599_vm2 = vcmask 1043456   ;;  %s3756_s26 = sld [smem:[#allocation32_spill]] }
 0x3ef   : > { %1579 = vxpose.xlu0.c.b16.start.end [1/1] (short) (narrow) %v1208_v31, 16  ;;  %v1300_v42 = vld [vmem:[#allocation14] sm:$0xff]  ;;  %v1301_v43 = vld [vmem:[#allocation14 + $0x8] sm:$0xff]  ;;  %v2549_v44 = vpack.c.bf16 %v1321_v40, %v1320_v39  ;;  %v1322_v46 = vld [vmem:[#allocation16 + $0x30] sm:$0xff]  ;;  %vm1595_vm3 = vcmask 64512   ;;  %s1926_s24 = sshll.u32 %s3097_s27, 7 }
 0x3f0   : > { %2544 = vmatpush3.bf16.msra.mxu0 %v2543_v35  ;;  %v2567_v45 = vpack.c.bf16 %v1301_v43, %v1300_v42  ;;  %v1323_v47 = vld [vmem:[#allocation16 + $0x38] sm:$0xff]  ;;  %v1302_v48 = vld [vmem:[#allocation14 + $0x10] sm:$0xff]  ;;  %v1324_v52 = vld [vmem:[#allocation16 + $0x40] sm:$0xff]  ;;  %s1728_s19 = sshll.u32 %s681_s11, 4  ;;  %s3757_s1 = sld [smem:[#allocation43_spill]]  ;;  %s1729_s19 = int_to_ptr.vmem [resolvable:$true] %s1728_s19 }
 0x3f1   : > { %v1211_v28 = vld [vmem:[#allocation2 + $0x8] sm:$0xff]  ;;  %2545 = vmatprep.subr.bf16.mxu0 %v3128_v32  ;;  %v2552_v50 = vpack.c.bf16 %v1323_v47, %v1322_v46  ;;  %v1325_v53 = vld [vmem:[#allocation16 + $0x48] sm:$0xff]  ;;  %v1304_v54 = vld [vmem:[#allocation14 + $0x20] sm:$0xff]  ;;  %s1715_s6 = scalar_lea.sflag [#allocation7], %s679_s0  ;;  %s2999_s30 = scalar_lea.vmem %s1729_s19, 128 }
 0x3f2   : > { %v1210_v27 = vld [vmem:[#allocation2] sm:$0xff]  ;;  %v1303_v49 = vld [vmem:[#allocation14 + $0x18] sm:$0xff]  ;;  %v1305_v55 = vld [vmem:[#allocation14 + $0x28] sm:$0xff]  ;;  %v2555_v56 = vpack.c.bf16 %v1325_v53, %v1324_v52  ;;  %p3000_p6 = scmp.ne.s32.totalorder %s1729_s19, %s2999_s30  ;;  %s3129_s21 = smov [#allocation19]  }
 0x3f3   : > { %v1212_v30 = vpack.c.bf16 %v1211_v28, %v1210_v27  ;;  %1650 = vxpose.xlu0.c.b16.start.end [1/1] (short) (narrow) %v1209_v41, 16  ;;  %v2570_v51 = vpack.c.bf16 %v1303_v49, %v1302_v48  ;;  %v2573_v57 = vpack.c.bf16 %v1305_v55, %v1304_v54  ;;  %v1326_v58 = vld [vmem:[#allocation16 + $0x50] sm:$0xff]  ;;  %v1327_v59 = vld [vmem:[#allocation16 + $0x58] sm:$0xff]  ;;  %v1308_v0 = vld [vmem:[#allocation14 + $0x40] sm:$0xff]  ;;  %s3003_s17 = sshll.u32 %s3129_s21, 4  ;;  %s3004_s17 = int_to_ptr.vmem [resolvable:$false] %s3003_s17 }
 0x3f4   : > { %2547 = vmatpush3.bf16.msra.mxu0 %v2546_v38  ;;  %v1306_v60 = vld [vmem:[#allocation14 + $0x30] sm:$0xff]  ;;  %v1307_v61 = vld [vmem:[#allocation14 + $0x38] sm:$0xff]  ;;  %v2558_v62 = vpack.c.bf16 %v1327_v59, %v1326_v58  ;;  %v1309_v1 = vld [vmem:[#allocation14 + $0x48] sm:$0xff]  ;;  %p3758_p7 = scmp.ne.s32.totalorder %s3756_s26, 0  ;;  %p3006_p13 = scmp.lt.s32.totalorder %s1729_s19, %s3004_s17 }
 0x3f5   : > { %2254 = vmatpush3.bf16.msra.mxu1 %v1212_v30  ;;  %2548 = vmatprep.subr.bf16.mxu0 %v3128_v32  ;;  %v2576_v63 = vpack.c.bf16 %v1307_v61, %v1306_v60  ;;  %v2579_v2 = vpack.c.bf16 %v1309_v1, %v1308_v0  ;;  %v1310_v3 = vld [vmem:[#allocation14 + $0x50] sm:$0xff]  ;;  %v1311_v4 = vld [vmem:[#allocation14 + $0x58] sm:$0xff]  ;;  %v1312_v6 = vld [vmem:[#allocation14 + $0x60] sm:$0xff] }
 0x3f6   : > { %2259 = vmatprep.subr.bf16.mxu1 %v3126_v29  ;;  %v2582_v5 = vpack.c.bf16 %v1311_v4, %v1310_v3  ;;  %v1313_v7 = vld [vmem:[#allocation14 + $0x68] sm:$0xff]  ;;  %v1314_v9 = vld [vmem:[#allocation14 + $0x70] sm:$0xff]  ;;  %v1315_v10 = vld [vmem:[#allocation14 + $0x78] sm:$0xff]  ;;  %s3639_s28 = scalar_lea.hbm %s3757_s1, %s1926_s24  ;;  %p3001_p9 = pnand %p3000_p6, %p3758_p7 }
 0x3f7   : > { %v2585_v8 = vpack.c.bf16 %v1313_v7, %v1312_v6  ;;  %v2588_v11 = vpack.c.bf16 %v1315_v10, %v1314_v9  ;;  %v1328_v12 = vld [vmem:[#allocation16 + $0x60] sm:$0xff]  ;;  %v1329_v13 = vld [vmem:[#allocation16 + $0x68] sm:$0xff]  ;;  %v1330_v15 = vld [vmem:[#allocation16 + $0x70] sm:$0xff] }
 0x3f8   : > { %2256 = vmatmul.mubr.msk.bf16.vlgmr.msra.gmra.mrb[0].mxu1 %vm1213_vm1, %v1208_v31  ;;  %2550 = vmatpush3.bf16.msra.mxu0 %v2549_v44  ;;  %v2561_v14 = vpack.c.bf16 %v1329_v13, %v1328_v12  ;;  %v1331_v16 = vld [vmem:[#allocation16 + $0x78] sm:$0xff]  ;;  %v1481_v22 = vld [vmem:[#allocation17] sm:$0xff]  ;;  %v1482_v23 = vld [vmem:[#allocation17 + $0x8] sm:$0xff]  ;;  %p3002_p10 = pneg %p3001_p9 }
 0x3f9   : > { %2260 = vmatpush3.bf16.msra.mxu1 %v1212_v30  ;;  %2261 = vmatprep.mubr.msk.bf16.mxu1 %vm3127_vm0, %v3126_v29  ;;  %v2564_v17 = vpack.c.bf16 %v1331_v16, %v1330_v15  ;;  %v2591_v24 = vpack.c.bf16 %v1482_v23, %v1481_v22  ;;  %v1483_v25 = vld [vmem:[#allocation17 + $0x10] sm:$0xff]  ;;  %v1484_v26 = vld [vmem:[#allocation17 + $0x18] sm:$0xff]  ;;  %v1485_v34 = vld [vmem:[#allocation17 + $0x20] sm:$0xff] }
 0x3fa   : > { %2566 = vmatprep.subr.bf16.mxu1 %v3128_v32  ;;  %2551 = vmatprep.subr.bf16.mxu0 %v3128_v32  ;;  %v2594_v31 = vpack.c.bf16 %v1484_v26, %v1483_v25  ;;  %v1486_v35 = vld [vmem:[#allocation17 + $0x28] sm:$0xff]  ;;  %v1487_v37 = vld [vmem:[#allocation17 + $0x30] sm:$0xff]  ;;  %v1488_v38 = vld [vmem:[#allocation17 + $0x38] sm:$0xff] }
 0x3fb   : > { %v2597_v36 = vpack.c.bf16 %v1486_v35, %v1485_v34  ;;  %v2600_v39 = vpack.c.bf16 %v1488_v38, %v1487_v37  ;;  %v1489_v40 = vld [vmem:[#allocation17 + $0x40] sm:$0xff]  ;;  %v1491_v43 = vld [vmem:[#allocation17 + $0x50] sm:$0xff]  ;;  %v1492_v44 = vld [vmem:[#allocation17 + $0x58] sm:$0xff] }
 0x3fc   : > { %2553 = vmatpush3.bf16.msra.mxu0 %v2552_v50  ;;  %v1493_v46 = vld [vmem:[#allocation17 + $0x60] sm:$0xff]  ;;  %v1494_v47 = vld [vmem:[#allocation17 + $0x68] sm:$0xff]  ;;  %v1495_v49 = vld [vmem:[#allocation17 + $0x70] sm:$0xff] }
 0x3fd   : > { %2554 = vmatprep.subr.bf16.mxu0 %v3128_v32  ;;  %v2609_v48 = vpack.c.bf16 %v1494_v47, %v1493_v46  ;;  %v1496_v50 = vld [vmem:[#allocation17 + $0x78] sm:$0xff]  ;;  %v1921_v55 = vld [vmem:[%s3754_s29] ss:$0 sm:$0xff]  ;;  %s3005_s29 = scalar_lea.vmem %s3004_s17, 256 }
 0x3fe   : > { %p3007_p1 = scmp.lt.s32.totalorder %s3005_s29, %s2999_s30 }
 0x400   : > { %2262 = vmatmul.mubr.msk.bf16.vlgmr.msra.gmra.mrb[4].mxu1 %vm1213_vm1, %v1209_v41  ;;  %2556 = vmatpush3.bf16.msra.mxu0 %v2555_v56  ;;  %v1490_v41 = vld [vmem:[#allocation17 + $0x48] sm:$0xff]  ;;  %p3008_p4 = por %p3007_p1, %p3006_p13 }
 0x401   : > { %2568 = vmatpush3.bf16.msra.mxu1 %v2567_v45  ;;  %2332 = vmatprep.mubr.msk.f32.mxu1 %vm3127_vm0, %v3126_v29  ;;  %v2603_v42 = vpack.c.bf16 %v1490_v41, %v1489_v40  ;;  %v2606_v45 = vpack.c.bf16 %v1492_v44, %v1491_v43 }
 0x402   : > { %2569 = vmatprep.subr.bf16.mxu1 %v3128_v32  ;;  %2557 = vmatprep.subr.bf16.mxu0 %v3128_v32  ;;  %p3009_p3 = pnand %p3008_p4, %p3002_p10 }
 0x404   : > { %2559 = vmatpush3.bf16.msra.mxu0 %v2558_v62 }
 0x405   : > { %2571 = vmatpush3.bf16.msra.mxu1 %v2570_v51  ;;  %2560 = vmatprep.subr.bf16.mxu0 %v3128_v32  ;;  %v2612_v51 = vpack.c.bf16 %v1496_v50, %v1495_v49 }
 0x406   : > { %2572 = vmatprep.subr.bf16.mxu1 %v3128_v32 }
 0x408   : > { %2562 = vmatpush3.bf16.msra.mxu0 %v2561_v14 }
 0x409   : > { %2574 = vmatpush3.bf16.msra.mxu1 %v2573_v57  ;;  %2563 = vmatprep.subr.bf16.mxu0 %v3128_v32 }
 0x40a   : > { %2575 = vmatprep.subr.bf16.mxu1 %v3128_v32 }
 0x40c   : > { %2565 = vmatpush3.bf16.msra.mxu0 %v2564_v17 }
 0x40d   : > { %2577 = vmatpush3.bf16.msra.mxu1 %v2576_v63  ;;  %2590 = vmatprep.subr.bf16.mxu0 %v3128_v32 }
 0x40e   : > { %2578 = vmatprep.subr.bf16.mxu1 %v3128_v32 }
 0x411   : > { %2580 = vmatpush3.bf16.msra.mxu1 %v2579_v2 }
 0x412   : > { %2581 = vmatprep.subr.bf16.mxu1 %v3128_v32 }
 0x415   : > { %2583 = vmatpush3.bf16.msra.mxu1 %v2582_v5 }
 0x416   : > { %2584 = vmatprep.subr.bf16.mxu1 %v3128_v32 }
 0x419   : > { %2586 = vmatpush3.bf16.msra.mxu1 %v2585_v8 }
 0x41a   : > { %2587 = vmatprep.subr.bf16.mxu1 %v3128_v32 }
 0x41d   : > { %2589 = vmatpush3.bf16.msra.mxu1 %v2588_v11 }
 0x41e   : > { %2370 = vmatprep.subr.bf16.mxu1 %v3126_v29 }
 0x455   : > { %v1587_v2 = vpop.trf.xlu0 }
 0x459   : > { %v1658_v3 = vpop.trf.xlu0 }
 0x4cb   : > { %v1251_v19 = vpop.f32.mrb[0].mxu1 }
 0x4cc   : > { %v2257_v20 = vpop.f32.mrb[1].mxu1  ;;  %2333 = vmatmul.mubr.f32.vlgmr.msra.gmra.mrb[8].mxu1 %v1251_v19 }
 0x4cd   : > { %v1254_v18 = vpop.f32.mrb[2].mxu1  ;;  %2372 = vmatprep.mubr.msk.bf16.mxu1 %vm3127_vm0, %v3126_v29 }
 0x4ce   : > { %v2258_v21 = vpop.f32.mrb[3].mxu1 }
 0x4d3   : > { %v1294_v27 = vpop.f32.mrb[4].mxu1 }
 0x4d4   : > { %v2263_v28 = vpop.f32.mrb[5].mxu1  ;;  %2298 = vmatmul.mubr.f32.vlgmr.msra.gmra.mrb[0].mxu0 %v1294_v27 }
 0x4d5   : > { %v1297_v30 = vpop.f32.mrb[6].mxu1  ;;  %2592 = vmatpush3.bf16.msra.mxu0 %v2591_v24  ;;  %2367 = vmatprep.mubr.msk.f32.mxu0 %vm3127_vm0, %v3126_v29 }
 0x4d6   : > { %v2264_v33 = vpop.f32.mrb[7].mxu1  ;;  %2593 = vmatprep.subr.bf16.mxu0 %v3128_v32 }
 0x4d9   : > { %2595 = vmatpush3.bf16.msra.mxu0 %v2594_v31 }
 0x4da   : > { %2596 = vmatprep.subr.bf16.mxu0 %v3128_v32 }
 0x4dd   : > { %2598 = vmatpush3.bf16.msra.mxu0 %v2597_v36 }
 0x4de   : > { %2599 = vmatprep.subr.bf16.mxu0 %v3128_v32 }
 0x4e1   : > { %2601 = vmatpush3.bf16.msra.mxu0 %v2600_v39 }
 0x4e2   : > { %2602 = vmatprep.subr.bf16.mxu0 %v3128_v32 }
 0x4e5   : > { %2604 = vmatpush3.bf16.msra.mxu0 %v2603_v42 }
 0x4e6   : > { %2605 = vmatprep.subr.bf16.mxu0 %v3128_v32 }
 0x4e9   : > { %2607 = vmatpush3.bf16.msra.mxu0 %v2606_v45 }
 0x4ea   : > { %2608 = vmatprep.subr.bf16.mxu0 %v3128_v32 }
 0x4ed   : > { %2610 = vmatpush3.bf16.msra.mxu0 %v2609_v48 }
 0x4ee   : > { %2611 = vmatprep.subr.bf16.mxu0 %v3128_v32  ;;  %v1922_v32 = vld [vmem:[%s3755_s22] ss:$0 sm:$0xff] }
 0x4f1   : > { %2613 = vmatpush3.bf16.msra.mxu0 %v2612_v51 }
 0x59f   : > { %v1468_v52 = vpop.f32.mrb[8].mxu1 }
 0x5a0   : > { %v2334_v53 = vpop.f32.mrb[9].mxu1 }
 0x5a7   : > { %v1398_v54 = vpop.f32.mrb[0].mxu0 }
 0x5a8   : > { %v1469_v56 = vadd.f32 %v1468_v52, %v1398_v54  ;;  %v2299_v57 = vpop.f32.mrb[1].mxu0 }
 0x5aa   : > { %v1479_v58 = vadd.f32 %v1921_v55, %v1469_v56 }
 0x5ac   : > { %v1480_v59 = vmax.f32 %v1479_v58, 0.0 }
 0x5ae   : > { %2368 = vmatmul.mubr.f32.vlgmr.msra.gmra.mrb[2].mxu0 %v1480_v59 }
 0x681   : > { %v1570_v60 = vpop.f32.mrb[2].mxu0 }
 0x682   : > { %v1571_v61 = vadd.f32 %v1922_v32, %v1570_v60  ;;  %v2369_v62 = vpop.f32.mrb[3].mxu0 }
 0x684   : > { %v1574_v63 = vmax.f32 %v1571_v61, 0.0 }
 0x686   : > { %1575 = vst [vmem:[%s681_s11] sm:$0xff] %v1574_v63  ;;  %v1576_v0 = vpack.c.bf16 %v1574_v63, %v1574_v63 }
 0x688   : > { %v1601_v1 = vsel %vm1599_vm2, %v1576_v0, 0 }
 0x689   : > { %2371 = vmatpush3.bf16.msra.mxu1 %v1601_v1 }
 0x68a   : > { %2376 = vmatprep.subr.bf16.mxu1 %v3126_v29 }
 0x68c   : > { %2373 = vmatmul.mubr.msk.bf16.vlgmr.msra.gmra.mrb[12].mxu1 %vm1595_vm3, %v1587_v2 }
 0x68d   : > { %2377 = vmatpush3.bf16.msra.mxu1 %v1601_v1  ;;  %2378 = vmatprep.mubr.msk.bf16.mxu1 %vm3127_vm0, %v3126_v29 }
 0x694   : > { %2379 = vmatmul.mubr.msk.bf16.vlgmr.msra.gmra.mrb[16].mxu1 %vm1595_vm3, %v1658_v3 }
 0x695   : > { %3012 = shalt.err (!%p3009_p3)
}
 0x696   : > { %s3013_s27 = scalar_lea.hbm %s3639_s28, 128  ;;  %s3017_s11 = scalar_lea.hbm %s3757_s1, 384 }
 0x697   : > { %p3014_p8 = scmp.ne.s32.totalorder %s3639_s28, %s3013_s27  ;;  %p3018_p0 = scmp.lt.u32.totalorder %s3639_s28, %s3757_s1 }
 0x698   : > { %p3019_p12 = scmp.lt.u32.totalorder %s3017_s11, %s3013_s27  ;;  %p3021_p6 = scmp.lt.u32.totalorder %s3013_s27, %s3639_s28 }
 0x699   : > { %p3015_p11 = pnand %p3014_p8, %p3758_p7 }
 0x69a   : > { %p3020_p5 = por %p3019_p12, %p3018_p0 }
 0x69b   : > { %p3016_p2 = pneg %p3015_p11 }
 0x69c   : > { %p3022_p9 = por %p3021_p6, %p3020_p5 }
 0x69e   : > { %p3023_p10 = pnand %p3022_p9, %p3016_p2 }
 0x6a0   : > { %3026 = shalt.err (!%p3023_p10)
}
 0x6a1   : > { %2648 = dma.vmem_to_hbm [thread:$0]  (%p3758_p7), %s1729_s19, 128, %s3639_s28, %s1715_s6   ;;  %v1577_v29 = vld [vmem:[#allocation3] sm:$0xff]  ;;  %v1578_v5 = vld [vmem:[#allocation3 + $0x8] sm:$0xff]  ;;  %v1648_v11 = vld [vmem:[#allocation4] sm:$0xff] }
 0x6a2   : > { %v1649_v13 = vld [vmem:[#allocation4 + $0x8] sm:$0xff] }
 0x75f   : > { %v1637_v4 = vpop.f32.mrb[12].mxu1 }
 0x760   : > { %v1644_v6 = vadd.f32 %v1637_v4, %v1577_v29  ;;  %v2374_v7 = vpop.f32.mrb[13].mxu1 }
 0x761   : > { %v1640_v8 = vpop.f32.mrb[14].mxu1 }
 0x762   : > { %1646 = vst [vmem:[#allocation3] sm:$0xff] %v1644_v6  ;;  %v1645_v9 = vadd.f32 %v1640_v8, %v1578_v5  ;;  %v2375_v10 = vpop.f32.mrb[15].mxu1 }
 0x764   : > { %1647 = vst [vmem:[#allocation3 + $0x8] sm:$0xff] %v1645_v9 }
 0x767   : > { %v1703_v12 = vpop.f32.mrb[16].mxu1 }
 0x768   : > { %v1710_v14 = vadd.f32 %v1703_v12, %v1648_v11  ;;  %v2380_v15 = vpop.f32.mrb[17].mxu1 }
 0x769   : > { %v1706_v16 = vpop.f32.mrb[18].mxu1 }
 0x76a   : > { %1712 = vst [vmem:[#allocation4] sm:$0xff] %v1710_v14  ;;  %v1711_v17 = vadd.f32 %v1706_v16, %v1649_v13  ;;  %v2381_v19 = vpop.f32.mrb[19].mxu1 }
 0x76c   : > { %1713 = vst [vmem:[#allocation4 + $0x8] sm:$0xff] %v1711_v17 }
 0x76d PF: > { %s3759_s22 = sld [smem:[#allocation30_spill]]  ;;  %s3760_s26 = sld [smem:[#allocation26_spill]] }
 0x76e   : > { %s3761_s24 = sld [smem:[#allocation35_spill]] }
 0x773   : > { %p2695_p7 = scmp.ge.s32.totalorder %s3759_s22, 2  ;;  %s1740_s19 = sand.u32 1, %s3760_s26  }
 0x774   : > { %p3762_p13 = scmp.ne.s32.totalorder %s3761_s24, 0  ;;  %s1741_s16 = scalar_lea.sflag [#allocation7], %s1740_s19 }
 0x776   : > { %p2676_p1 = pnand %p2695_p7, %p3762_p13 }
 0x778   : > { %3080 = dma.done.wait (!%p2676_p1), %s1741_s16, 128  }
 0x779   : > { %3082 = vsyncadd (!%p2676_p1), %s1741_s16, 4294967168  ;;  %s35_s30 = sadd.s32 1, %s3759_s22   ;;  %s3763_s20 = sld [smem:[#allocation27_spill]] }
 0x77a   : > { %p32_p4 = scmp.ge.s32.totalorder %s35_s30, 8   ;;  %s3764_s26 = sld [smem:[#allocation34_spill]] }
 0x77b   : > { %s3765_s27 = sld [smem:[#allocation28_spill]]  ;;  %s3766_s28 = sld [smem:[#allocation29_spill]] }
 0x77c   : > { %s3767_s29 = sld [smem:[#allocation31_spill]]  ;;  %s3768_s0 = sld [smem:[#allocation33_spill]] }
 0x77d   : > { %s3769_s24 = smov %s3089_s25  ;;  %34 = sbr.rel (!%p32_p4) target bundleno = 19 (0x13), region = 167 }
 0x77f   : > { %s3770_s25 = smov %s3763_s20 }
 0x784   :  { %1746 = vsyncpa [#allocation6], 1 }
 0x785   :  { %1748 = vsyncpa [#allocation6 + $0x1], 1 }
 0x786   :  { %1749 = vsyncpa [#allocation9], 1 }
 0x787   :  { %1750 = vsyncpa [#allocation12], 1 }
 0x788   :  { %1751 = vsyncpa [#allocation15], 1 }
 0x789   :  { %1752 = vsyncpa [#allocation18], 1 }
 0x78a   :  { %1753 = vsyncpa [#allocation7], 1 }
 0x78b   :  { %1755 = vsyncpa [#allocation7 + $0x1], 1 }

</bundles_post_ra>
